<compile_context>
chip_gen: v7x
topology: tpu7x:2x2x1
jax: 0.10.0
libtpu: 0.0.40
codegen_flags: <defaults>
</compile_context>

<pallas_src>
import math

import jax
import jax.numpy as jnp
import numpy as np
from jax import lax
from jax.experimental import pallas as pl
from jax.experimental.pallas import tpu as pltpu

# ---- synthetic "HF bert-like" config --------------------------------------
B = 2              # batch
S = 8              # sequence length (context_length)
D = 32             # hidden width (d_model)
NUM_HEADS = 2
HEAD_DIM = D // NUM_HEADS
NUM_LAYERS = 2
F = 64             # FFN intermediate size
O = 16             # output_dim (d_model != output_dim -> Linear proj, bias=False)
VOCAB = 64
PAD_ID = 0
LN_EPS = 1e-12
NEG_INF = -1e9


def _layer_norm(x, g, b):
    mu = jnp.mean(x, axis=-1, keepdims=True)
    var = jnp.mean((x - mu) ** 2, axis=-1, keepdims=True)
    return (x - mu) * lax.rsqrt(var + LN_EPS) * g + b


# ---------------------------------------------------------------------------
# Pallas kernel: grid axis = transformer layer (sequential, "arbitrary").
# The hidden state (B*S, D) lives in a VMEM scratch across grid steps.
# ---------------------------------------------------------------------------
def encoder_kernel(len_ref, emb_ref, eln_g_ref, eln_b_ref,
                   wqkv_ref, bqkv_ref, wo_ref, bo_ref,
                   ln1_g_ref, ln1_b_ref,
                   w1_ref, b1_ref, w2_ref, b2_ref,
                   ln2_g_ref, ln2_b_ref,
                   projw_ref,
                   proj_out_ref,
                   h_ref):
    layer = pl.program_id(0)
    bs, d = h_ref.shape
    bsz = len_ref.shape[0]
    seq = bs // bsz
    hd = d // NUM_HEADS

    # ---- first grid step: embedding LayerNorm into the resident hidden state.
    @pl.when(layer == 0)
    def _():
        h_ref[...] = _layer_norm(emb_ref[...], eln_g_ref[...], eln_b_ref[...])

    # ---- additive attention bias from valid lengths (single iota + compare).
    # NOTE: assumes right-padded sequences (standard HF tokenizer layout).
    col = lax.broadcasted_iota(jnp.int32, (bsz, 1, seq), 2)
    bias = jnp.where(col < len_ref[...].reshape(bsz, 1, 1),
                     jnp.float32(0.0), jnp.float32(NEG_INF))          # (B, 1, S)

    h = h_ref[...]                                                    # (B*S, D) f32
    h_bf = h.astype(jnp.bfloat16)

    # ---- fused QKV projection: one (B*S, D) @ (D, 3D) matmul.
    # 1/sqrt(HEAD_DIM) already folded into the Q columns / Q bias at param-prep.
    qkv = jnp.dot(h_bf, wqkv_ref[0],
                  preferred_element_type=jnp.float32) + bqkv_ref[0]   # (B*S, 3D)
    qkv_bf = qkv.astype(jnp.bfloat16)

    # ---- per-head attention: heads are lane slices of the fused projection,
    # no activation/weight replication.
    ctx_heads = []
    for hh in range(NUM_HEADS):
        qh = qkv_bf[:, hh * hd:(hh + 1) * hd].reshape(bsz, seq, hd)
        kh = qkv_bf[:, d + hh * hd:d + (hh + 1) * hd].reshape(bsz, seq, hd)
        vh = qkv_bf[:, 2 * d + hh * hd:2 * d + (hh + 1) * hd].reshape(bsz, seq, hd)
        s = jnp.einsum('bqd,bkd->bqk', qh, kh,
                       preferred_element_type=jnp.float32) + bias     # (B, S, S)
        s = s - jnp.max(s, axis=-1, keepdims=True)
        p = jnp.exp(s)
        p = p * pl.reciprocal(jnp.sum(p, axis=-1, keepdims=True), approx=True)
        ctx_heads.append(jnp.einsum('bqk,bkd->bqd', p.astype(jnp.bfloat16), vh,
                                    preferred_element_type=jnp.float32))

    # Concat heads on the lane axis -> (B*S, D), then ONE (D, D) output projection.
    ctx = jnp.concatenate(ctx_heads, axis=-1).reshape(bs, d)
    attn = jnp.dot(ctx.astype(jnp.bfloat16), wo_ref[0],
                   preferred_element_type=jnp.float32) + bo_ref[0]
    h = _layer_norm(h + attn, ln1_g_ref[0], ln1_b_ref[0])

    # ---- feed-forward ------------------------------------------------------
    ff = jnp.dot(h.astype(jnp.bfloat16), w1_ref[0],
                 preferred_element_type=jnp.float32) + b1_ref[0]
    ff = jax.nn.gelu(ff, approximate=True)  # TODO(synk): HF BERT gelu is erf-based; tanh approx used
    ff = jnp.dot(ff.astype(jnp.bfloat16), w2_ref[0],
                 preferred_element_type=jnp.float32) + b2_ref[0]
    h = _layer_norm(h + ff, ln2_g_ref[0], ln2_b_ref[0])
    h_ref[...] = h

    # ---- ClsPooler: strided read of row 0 of every sequence, then Linear proj.
    cls = h_ref[pl.ds(0, bsz, stride=seq), :]                         # (B, D)
    proj_out_ref[...] = jnp.dot(cls.astype(jnp.bfloat16), projw_ref[...],
                                preferred_element_type=jnp.float32)


# ---------------------------------------------------------------------------
# One-time host-side parameter prep: fold 1/sqrt(HEAD_DIM) into the Q columns
# of the fused QKV weight/bias, cast matmul weights to bf16 (biases/LN stay f32).
# ---------------------------------------------------------------------------
def prepare_kernel_params(params):
    inv = 1.0 / math.sqrt(HEAD_DIM)
    q_scale = jnp.concatenate([jnp.full((D,), inv, jnp.float32),
                               jnp.ones((2 * D,), jnp.float32)])        # (3D,)
    kp = dict(params)
    kp['wqkv_bf'] = (params['wqkv'] * q_scale[None, None, :]).astype(jnp.bfloat16)
    kp['bqkv_s'] = params['bqkv'] * q_scale[None, None, :]
    kp['wo_bf'] = params['wo'].astype(jnp.bfloat16)
    kp['w1_bf'] = params['w1'].astype(jnp.bfloat16)
    kp['w2_bf'] = params['w2'].astype(jnp.bfloat16)
    kp['proj_w_bf'] = params['proj_w'].astype(jnp.bfloat16)
    return kp


# ---------------------------------------------------------------------------
# Wrapper: host-side embedding gather + valid lengths, then pallas_call with a
# layer grid axis so only one layer's weights (double-buffered) sit in VMEM.
# ---------------------------------------------------------------------------
def hf_text_encoder_forward(x_ids, kp):
    Bx, Sx = x_ids.shape
    lengths = jnp.sum((x_ids != PAD_ID).astype(jnp.int32), axis=-1).reshape(Bx, 1)
    pos = jnp.arange(Sx)
    emb = (kp['tok_emb'][x_ids] + kp['pos_emb'][pos][None, :, :]
           + kp['type_emb'][0][None, None, :]).astype(jnp.float32)
    emb = emb.reshape(Bx * Sx, D)                                     # sublane-dense

    const2 = lambda shape: pl.BlockSpec(shape, lambda l: (0, 0))       # resident, fetched once
    layer3 = lambda shape: pl.BlockSpec((1,) + shape, lambda l: (l, 0, 0))  # streamed per layer

    grid_spec = pltpu.PrefetchScalarGridSpec(
        num_scalar_prefetch=0,
        grid=(NUM_LAYERS,),
        in_specs=[
            const2((Bx, 1)),                 # valid lengths
            const2((Bx * Sx, D)),            # embeddings
            const2((1, D)), const2((1, D)),  # embedding LayerNorm g, b
            layer3((D, 3 * D)),              # fused QKV weight (Q pre-scaled)
            layer3((1, 3 * D)),              # fused QKV bias
            layer3((D, D)),                  # attention output proj
            layer3((1, D)),                  # attention output bias
            layer3((1, D)), layer3((1, D)),  # LN1 g, b
            layer3((D, F)),                  # FFN w1
            layer3((1, F)),                  # FFN b1
            layer3((F, D)),                  # FFN w2
            layer3((1, D)),                  # FFN b2
            layer3((1, D)), layer3((1, D)),  # LN2 g, b
            const2((D, O)),                  # text projection (bias=False)
        ],
        out_specs=pl.BlockSpec((Bx, O), lambda l: (0, 0)),
        scratch_shapes=[pltpu.VMEM((Bx * Sx, D), jnp.float32)],   # resident hidden state
    )

    # TODO(synk): at real BERT sizes (D=768, F=3072, L=12) additionally block w1/w2
    # along F, set vmem_limit_bytes explicitly (v7x: 64 MiB VMEM), pad S/O to 128
    # lanes, and add a leading parallel batch grid axis for v7x megacore.
    projected = pl.pallas_call(
        encoder_kernel,
        out_shape=jax.ShapeDtypeStruct((Bx, O), jnp.float32),
        grid_spec=grid_spec,
        compiler_params=pltpu.CompilerParams(
            dimension_semantics=("arbitrary",)),
    )(lengths, emb,
      kp['eln_g'], kp['eln_b'],
      kp['wqkv_bf'], kp['bqkv_s'], kp['wo_bf'], kp['bo'],
      kp['ln1_g'], kp['ln1_b'],
      kp['w1_bf'], kp['b1'], kp['w2_bf'], kp['b2'],
      kp['ln2_g'], kp['ln2_b'], kp['proj_w_bf'])

    # output_tokens=False -> the module returns only `projected`.
    return projected


# ---------------------------------------------------------------------------
# Pure-JAX reference (canonical per-head BERT math, bf16 matmul operands with
# f32 accumulation to mirror the kernel's precision choices).
# ---------------------------------------------------------------------------
def reference_forward(x_ids, params):
    Bx, Sx = x_ids.shape
    bf = lambda t: t.astype(jnp.bfloat16)
    mask_bias = jnp.where(x_ids != PAD_ID, 0.0, NEG_INF
                          ).astype(jnp.float32)[:, None, None, :]     # (B,1,1,S)
    pos = jnp.arange(Sx)
    h = (params['tok_emb'][x_ids] + params['pos_emb'][pos][None, :, :]
         + params['type_emb'][0][None, None, :])
    h = _layer_norm(h, params['eln_g'], params['eln_b'])

    scale = 1.0 / math.sqrt(HEAD_DIM)
    for l in range(NUM_LAYERS):
        qkv = jnp.einsum('bsd,de->bse', bf(h), bf(params['wqkv'][l]),
                         preferred_element_type=jnp.float32) + params['bqkv'][l][None]
        q, k, v = qkv[..., :D], qkv[..., D:2 * D], qkv[..., 2 * D:]
        split = lambda t: t.reshape(Bx, Sx, NUM_HEADS, HEAD_DIM).transpose(0, 2, 1, 3)
        qh, kh, vh = split(q), split(k), split(v)
        scores = jnp.einsum('bhqd,bhkd->bhqk', bf(qh), bf(kh),
                            preferred_element_type=jnp.float32) * scale + mask_bias
        p = jax.nn.softmax(scores, axis=-1)
        ctx = jnp.einsum('bhqk,bhkd->bhqd', bf(p), bf(vh),
                         preferred_element_type=jnp.float32)
        ctx = ctx.transpose(0, 2, 1, 3).reshape(Bx, Sx, D)
        attn = jnp.einsum('bsd,de->bse', bf(ctx), bf(params['wo'][l]),
                          preferred_element_type=jnp.float32) + params['bo'][l][None]
        h = _layer_norm(h + attn, params['ln1_g'][l], params['ln1_b'][l])
        ff = jnp.einsum('bsd,df->bsf', bf(h), bf(params['w1'][l]),
                        preferred_element_type=jnp.float32) + params['b1'][l][None]
        ff = jax.nn.gelu(ff, approximate=True)
        ff = jnp.einsum('bsf,fd->bsd', bf(ff), bf(params['w2'][l]),
                        preferred_element_type=jnp.float32) + params['b2'][l][None]
        h = _layer_norm(h + ff, params['ln2_g'][l], params['ln2_b'][l])

    pooled = h[:, 0, :]
    return jnp.einsum('bd,do->bo', bf(pooled), bf(params['proj_w']),
                      preferred_element_type=jnp.float32)


# ---------------------------------------------------------------------------
# Deterministic parameter init (synthetic weights, BERT-style std=0.02)
# ---------------------------------------------------------------------------
def init_params(key):
    ks = jax.random.split(key, 16)
    std = 0.02
    p = {}
    p['tok_emb'] = jax.random.normal(ks[0], (VOCAB, D), jnp.float32) * std
    p['pos_emb'] = jax.random.normal(ks[1], (S, D), jnp.float32) * std
    p['type_emb'] = jax.random.normal(ks[2], (1, D), jnp.float32) * std
    p['eln_g'] = jnp.ones((1, D), jnp.float32)
    p['eln_b'] = jnp.zeros((1, D), jnp.float32)
    p['wqkv'] = jax.random.normal(ks[3], (NUM_LAYERS, D, 3 * D), jnp.float32) * std
    p['bqkv'] = jax.random.normal(ks[4], (NUM_LAYERS, 1, 3 * D), jnp.float32) * std
    p['wo'] = jax.random.normal(ks[5], (NUM_LAYERS, D, D), jnp.float32) * std
    p['bo'] = jax.random.normal(ks[6], (NUM_LAYERS, 1, D), jnp.float32) * std
    p['ln1_g'] = jnp.ones((NUM_LAYERS, 1, D), jnp.float32)
    p['ln1_b'] = jnp.zeros((NUM_LAYERS, 1, D), jnp.float32)
    p['w1'] = jax.random.normal(ks[7], (NUM_LAYERS, D, F), jnp.float32) * std
    p['b1'] = jax.random.normal(ks[8], (NUM_LAYERS, 1, F), jnp.float32) * std
    p['w2'] = jax.random.normal(ks[9], (NUM_LAYERS, F, D), jnp.float32) * std
    p['b2'] = jax.random.normal(ks[10], (NUM_LAYERS, 1, D), jnp.float32) * std
    p['ln2_g'] = jnp.ones((NUM_LAYERS, 1, D), jnp.float32)
    p['ln2_b'] = jnp.zeros((NUM_LAYERS, 1, D), jnp.float32)
    p['proj_w'] = jax.random.normal(ks[11], (D, O), jnp.float32) * std
    return p


if __name__ == "__main__":
    key = jax.random.PRNGKey(0)
    pkey, dkey = jax.random.split(key)
    params = init_params(pkey)
    kparams = prepare_kernel_params(params)

    x = jax.random.randint(dkey, (B, S), 1, VOCAB, dtype=jnp.int32)
    x = x.at[1, S - 2:].set(PAD_ID)   # trailing pads exercise the attention mask

    projected = hf_text_encoder_forward(x, kparams)
    projected = jax.block_until_ready(projected)

    ref_proj = reference_forward(x, params)
    assert projected.shape == (B, O)
    np.testing.assert_allclose(np.asarray(projected), np.asarray(ref_proj),
                               atol=5e-3, rtol=5e-3)
    print("KERNEL_OK")
</pallas_src>

<mosaic_0001>
module attributes {stable_mosaic.version = 11 : i64} {
  func.func @encoder_kernel(%arg0: i32, %arg1: memref<2x1xi32, #tpu.memory_space<vmem>>, %arg2: memref<16x32xf32, #tpu.memory_space<vmem>>, %arg3: memref<1x32xf32, #tpu.memory_space<vmem>>, %arg4: memref<1x32xf32, #tpu.memory_space<vmem>>, %arg5: memref<1x32x96xbf16, #tpu.memory_space<vmem>>, %arg6: memref<1x1x96xf32, #tpu.memory_space<vmem>>, %arg7: memref<1x32x32xbf16, #tpu.memory_space<vmem>>, %arg8: memref<1x1x32xf32, #tpu.memory_space<vmem>>, %arg9: memref<1x1x32xf32, #tpu.memory_space<vmem>>, %arg10: memref<1x1x32xf32, #tpu.memory_space<vmem>>, %arg11: memref<1x32x64xbf16, #tpu.memory_space<vmem>>, %arg12: memref<1x1x64xf32, #tpu.memory_space<vmem>>, %arg13: memref<1x64x32xbf16, #tpu.memory_space<vmem>>, %arg14: memref<1x1x32xf32, #tpu.memory_space<vmem>>, %arg15: memref<1x1x32xf32, #tpu.memory_space<vmem>>, %arg16: memref<1x1x32xf32, #tpu.memory_space<vmem>>, %arg17: memref<32x16xbf16, #tpu.memory_space<vmem>>, %arg18: memref<2x16xf32, #tpu.memory_space<vmem>>, %arg19: memref<16x32xf32, #tpu.memory_space<vmem>>) attributes {dimension_semantics = [#tpu.dimension_semantics<arbitrary>], iteration_bounds = array<i64: 2>, scalar_prefetch = 0 : i64, scratch_operands = 1 : i64, tpu.core_type = #tpu.core_type<tc>, window_params = [{pipeline_mode = #tpu.pipeline_mode<synchronous>, transform_indices = @transform_0, window_bounds = array<i64: 2, 1>}, {pipeline_mode = #tpu.pipeline_mode<synchronous>, transform_indices = @transform_1, window_bounds = array<i64: 16, 32>}, {pipeline_mode = #tpu.pipeline_mode<synchronous>, transform_indices = @transform_2, window_bounds = array<i64: 1, 32>}, {pipeline_mode = #tpu.pipeline_mode<synchronous>, transform_indices = @transform_3, window_bounds = array<i64: 1, 32>}, {transform_indices = @transform_4, window_bounds = array<i64: 1, 32, 96>}, {transform_indices = @transform_5, window_bounds = array<i64: 1, 1, 96>}, {transform_indices = @transform_6, window_bounds = array<i64: 1, 32, 32>}, {transform_indices = @transform_7, window_bounds = array<i64: 1, 1, 32>}, {transform_indices = @transform_8, window_bounds = array<i64: 1, 1, 32>}, {transform_indices = @transform_9, window_bounds = array<i64: 1, 1, 32>}, {transform_indices = @transform_10, window_bounds = array<i64: 1, 32, 64>}, {transform_indices = @transform_11, window_bounds = array<i64: 1, 1, 64>}, {transform_indices = @transform_12, window_bounds = array<i64: 1, 64, 32>}, {transform_indices = @transform_13, window_bounds = array<i64: 1, 1, 32>}, {transform_indices = @transform_14, window_bounds = array<i64: 1, 1, 32>}, {transform_indices = @transform_15, window_bounds = array<i64: 1, 1, 32>}, {pipeline_mode = #tpu.pipeline_mode<synchronous>, transform_indices = @transform_16, window_bounds = array<i64: 32, 16>}, {pipeline_mode = #tpu.pipeline_mode<synchronous>, transform_indices = @transform_17, window_bounds = array<i64: 2, 16>}]} {
    %c0_i32 = arith.constant 0 : i32
    %0 = arith.cmpi eq, %arg0, %c0_i32 : i32
    %1 = arith.extui %0 : i1 to i32
    %c0_i32_0 = arith.constant 0 : i32
    %2 = arith.cmpi ne, %1, %c0_i32_0 : i32
    scf.if %2 {
      %c0_76 = arith.constant 0 : index
      %c0_77 = arith.constant 0 : index
      %162 = vector.load %arg2[%c0_76, %c0_77] : memref<16x32xf32, #tpu.memory_space<vmem>>, vector<16x32xf32>
      %c0_78 = arith.constant 0 : index
      %c0_79 = arith.constant 0 : index
      %163 = vector.load %arg3[%c0_78, %c0_79] : memref<1x32xf32, #tpu.memory_space<vmem>>, vector<1x32xf32>
      %c0_80 = arith.constant 0 : index
      %c0_81 = arith.constant 0 : index
      %164 = vector.load %arg4[%c0_80, %c0_81] : memref<1x32xf32, #tpu.memory_space<vmem>>, vector<1x32xf32>
      %cst_82 = arith.constant dense<0.000000e+00> : vector<16xf32>
      %165 = vector.multi_reduction <add>, %162, %cst_82 [1] : vector<16x32xf32> to vector<16xf32>
      %166 = vector.shape_cast %165 : vector<16xf32> to vector<16x1xf32>
      %cst_83 = arith.constant 3.200000e+01 : f32
      %167 = vector.broadcast %cst_83 : f32 to vector<16x1xf32>
      %168 = arith.divf %166, %167 : vector<16x1xf32>
      %169 = vector.broadcast %168 : vector<16x1xf32> to vector<16x32xf32>
      %170 = arith.subf %162, %169 : vector<16x32xf32>
      %171 = arith.mulf %170, %170 : vector<16x32xf32>
      %cst_84 = arith.constant dense<0.000000e+00> : vector<16xf32>
      %172 = vector.multi_reduction <add>, %171, %cst_84 [1] : vector<16x32xf32> to vector<16xf32>
      %173 = vector.shape_cast %172 : vector<16xf32> to vector<16x1xf32>
      %cst_85 = arith.constant 3.200000e+01 : f32
      %174 = vector.broadcast %cst_85 : f32 to vector<16x1xf32>
      %175 = arith.divf %173, %174 : vector<16x1xf32>
      %176 = vector.broadcast %168 : vector<16x1xf32> to vector<16x32xf32>
      %177 = arith.subf %162, %176 : vector<16x32xf32>
      %cst_86 = arith.constant 9.99999996E-13 : f32
      %178 = vector.broadcast %cst_86 : f32 to vector<16x1xf32>
      %179 = arith.addf %175, %178 : vector<16x1xf32>
      %180 = math.rsqrt %179 : vector<16x1xf32>
      %181 = vector.broadcast %180 : vector<16x1xf32> to vector<16x32xf32>
      %182 = arith.mulf %177, %181 : vector<16x32xf32>
      %183 = vector.broadcast %163 : vector<1x32xf32> to vector<16x32xf32>
      %184 = arith.mulf %182, %183 : vector<16x32xf32>
      %185 = vector.broadcast %164 : vector<1x32xf32> to vector<16x32xf32>
      %186 = arith.addf %184, %185 : vector<16x32xf32>
      %c0_87 = arith.constant 0 : index
      %c0_88 = arith.constant 0 : index
      %187 = vector.load %arg19[%c0_87, %c0_88] : memref<16x32xf32, #tpu.memory_space<vmem>>, vector<16x32xf32>
      tpu.vector_store %arg19[%c0_87, %c0_88], %186 {strides = array<i32>} : memref<16x32xf32, #tpu.memory_space<vmem>>, vector<16x32xf32>,
    } else {
    }
    %3 = tpu.iota {dimensions = array<i32: 2>} : vector<2x1x8xi32>
    %c0 = arith.constant 0 : index
    %c0_1 = arith.constant 0 : index
    %4 = vector.load %arg1[%c0, %c0_1] : memref<2x1xi32, #tpu.memory_space<vmem>>, vector<2x1xi32>
    %5 = vector.shape_cast %4 : vector<2x1xi32> to vector<2x1x1xi32>
    %6 = vector.broadcast %5 : vector<2x1x1xi32> to vector<2x1x8xi32>
    %7 = arith.cmpi slt, %3, %6 : vector<2x1x8xi32>
    %cst = arith.constant 0.000000e+00 : f32
    %cst_2 = arith.constant -1.000000e+09 : f32
    %8 = vector.broadcast %cst : f32 to vector<2x1x8xf32>
    %9 = vector.broadcast %cst_2 : f32 to vector<2x1x8xf32>
    %10 = arith.select %7, %8, %9 : vector<2x1x8xi1>, vector<2x1x8xf32>
    %c0_3 = arith.constant 0 : index
    %c0_4 = arith.constant 0 : index
    %11 = vector.load %arg19[%c0_3, %c0_4] : memref<16x32xf32, #tpu.memory_space<vmem>>, vector<16x32xf32>
    %12 = arith.truncf %11 : vector<16x32xf32> to vector<16x32xbf16>
    %c0_5 = arith.constant 0 : index
    %c0_6 = arith.constant 0 : index
    %c0_7 = arith.constant 0 : index
    %13 = vector.load %arg5[%c0_5, %c0_6, %c0_7] : memref<1x32x96xbf16, #tpu.memory_space<vmem>>, vector<1x32x96xbf16>
    %14 = vector.shape_cast %13 : vector<1x32x96xbf16> to vector<32x96xbf16>
    %cst_8 = arith.constant dense<0.000000e+00> : vector<16x96xf32>
    %15 = tpu.matmul %12, %14, %cst_8 {dimension_numbers = #tpu.dot_dimension_numbers<[1], [0], [0], [1], [0, 0, 1, 1], [], []>} : vector<16x32xbf16>, vector<32x96xbf16>, vector<16x96xf32> -> vector<16x96xf32>
    %c0_9 = arith.constant 0 : index
    %c0_10 = arith.constant 0 : index
    %c0_11 = arith.constant 0 : index
    %16 = vector.load %arg6[%c0_9, %c0_10, %c0_11] : memref<1x1x96xf32, #tpu.memory_space<vmem>>, vector<1x1x96xf32>
    %17 = vector.shape_cast %16 : vector<1x1x96xf32> to vector<1x96xf32>
    %18 = vector.broadcast %17 : vector<1x96xf32> to vector<16x96xf32>
    %19 = arith.addf %15, %18 : vector<16x96xf32>
    %20 = arith.truncf %19 : vector<16x96xf32> to vector<16x96xbf16>
    %21 = vector.extract_strided_slice %20 {offsets = [0, 0], sizes = [16, 16], strides = [1, 1]} : vector<16x96xbf16> to vector<16x16xbf16>
    %22 = vector.shape_cast %21 : vector<16x16xbf16> to vector<2x8x16xbf16>
    %23 = vector.extract_strided_slice %20 {offsets = [0, 32], sizes = [16, 16], strides = [1, 1]} : vector<16x96xbf16> to vector<16x16xbf16>
    %24 = vector.shape_cast %23 : vector<16x16xbf16> to vector<2x8x16xbf16>
    %25 = vector.extract_strided_slice %20 {offsets = [0, 64], sizes = [16, 16], strides = [1, 1]} : vector<16x96xbf16> to vector<16x16xbf16>
    %26 = vector.shape_cast %25 : vector<16x16xbf16> to vector<2x8x16xbf16>
    "tpu.trace_start"() <{level = 10 : i32, message = "bqd,bkd->bqk"}> : () -> ()
    %cst_12 = arith.constant dense<0.000000e+00> : vector<2x8x8xf32>
    %27 = tpu.matmul %22, %24, %cst_12 {dimension_numbers = #tpu.dot_dimension_numbers<[2], [2], [1], [1], [0, 0, 0, 1, 1, 1], [0], [0]>} : vector<2x8x16xbf16>, vector<2x8x16xbf16>, vector<2x8x8xf32> -> vector<2x8x8xf32>
    "tpu.trace_stop"() : () -> ()
    %28 = vector.broadcast %10 : vector<2x1x8xf32> to vector<2x8x8xf32>
    %29 = arith.addf %27, %28 : vector<2x8x8xf32>
    %cst_13 = arith.constant dense<0xFF800000> : vector<2x8xf32>
    %30 = vector.multi_reduction <maximumf>, %29, %cst_13 [2] : vector<2x8x8xf32> to vector<2x8xf32>
    %31 = vector.shape_cast %30 : vector<2x8xf32> to vector<2x8x1xf32>
    %32 = vector.broadcast %31 : vector<2x8x1xf32> to vector<2x8x8xf32>
    %33 = arith.subf %29, %32 : vector<2x8x8xf32>
    %34 = math.exp %33 : vector<2x8x8xf32>
    %cst_14 = arith.constant dense<0.000000e+00> : vector<2x8xf32>
    %35 = vector.multi_reduction <add>, %34, %cst_14 [2] : vector<2x8x8xf32> to vector<2x8xf32>
    %36 = vector.shape_cast %35 : vector<2x8xf32> to vector<2x8x1xf32>
    %37 = tpu.reciprocal %36 {approx = true} : vector<2x8x1xf32> -> vector<2x8x1xf32>
    %38 = vector.broadcast %37 : vector<2x8x1xf32> to vector<2x8x8xf32>
    %39 = arith.mulf %34, %38 : vector<2x8x8xf32>
    %40 = arith.truncf %39 : vector<2x8x8xf32> to vector<2x8x8xbf16>
    "tpu.trace_start"() <{level = 10 : i32, message = "bqk,bkd->bqd"}> : () -> ()
    %cst_15 = arith.constant dense<0.000000e+00> : vector<2x8x16xf32>
    %41 = tpu.matmul %40, %26, %cst_15 {dimension_numbers = #tpu.dot_dimension_numbers<[2], [1], [1], [2], [0, 0, 0, 1, 1, 2], [0], [0]>} : vector<2x8x8xbf16>, vector<2x8x16xbf16>, vector<2x8x16xf32> -> vector<2x8x16xf32>
    "tpu.trace_stop"() : () -> ()
    %42 = vector.extract_strided_slice %20 {offsets = [0, 16], sizes = [16, 16], strides = [1, 1]} : vector<16x96xbf16> to vector<16x16xbf16>
    %43 = vector.shape_cast %42 : vector<16x16xbf16> to vector<2x8x16xbf16>
    %44 = vector.extract_strided_slice %20 {offsets = [0, 48], sizes = [16, 16], strides = [1, 1]} : vector<16x96xbf16> to vector<16x16xbf16>
    %45 = vector.shape_cast %44 : vector<16x16xbf16> to vector<2x8x16xbf16>
    %46 = vector.extract_strided_slice %20 {offsets = [0, 80], sizes = [16, 16], strides = [1, 1]} : vector<16x96xbf16> to vector<16x16xbf16>
    %47 = vector.shape_cast %46 : vector<16x16xbf16> to vector<2x8x16xbf16>
    "tpu.trace_start"() <{level = 10 : i32, message = "bqd,bkd->bqk"}> : () -> ()
    %cst_16 = arith.constant dense<0.000000e+00> : vector<2x8x8xf32>
    %48 = tpu.matmul %43, %45, %cst_16 {dimension_numbers = #tpu.dot_dimension_numbers<[2], [2], [1], [1], [0, 0, 0, 1, 1, 1], [0], [0]>} : vector<2x8x16xbf16>, vector<2x8x16xbf16>, vector<2x8x8xf32> -> vector<2x8x8xf32>
    "tpu.trace_stop"() : () -> ()
    %49 = vector.broadcast %10 : vector<2x1x8xf32> to vector<2x8x8xf32>
    %50 = arith.addf %48, %49 : vector<2x8x8xf32>
    %cst_17 = arith.constant dense<0xFF800000> : vector<2x8xf32>
    %51 = vector.multi_reduction <maximumf>, %50, %cst_17 [2] : vector<2x8x8xf32> to vector<2x8xf32>
    %52 = vector.shape_cast %51 : vector<2x8xf32> to vector<2x8x1xf32>
    %53 = vector.broadcast %52 : vector<2x8x1xf32> to vector<2x8x8xf32>
    %54 = arith.subf %50, %53 : vector<2x8x8xf32>
    %55 = math.exp %54 : vector<2x8x8xf32>
    %cst_18 = arith.constant dense<0.000000e+00> : vector<2x8xf32>
    %56 = vector.multi_reduction <add>, %55, %cst_18 [2] : vector<2x8x8xf32> to vector<2x8xf32>
    %57 = vector.shape_cast %56 : vector<2x8xf32> to vector<2x8x1xf32>
    %58 = tpu.reciprocal %57 {approx = true} : vector<2x8x1xf32> -> vector<2x8x1xf32>
    %59 = vector.broadcast %58 : vector<2x8x1xf32> to vector<2x8x8xf32>
    %60 = arith.mulf %55, %59 : vector<2x8x8xf32>
    %61 = arith.truncf %60 : vector<2x8x8xf32> to vector<2x8x8xbf16>
    "tpu.trace_start"() <{level = 10 : i32, message = "bqk,bkd->bqd"}> : () -> ()
    %cst_19 = arith.constant dense<0.000000e+00> : vector<2x8x16xf32>
    %62 = tpu.matmul %61, %47, %cst_19 {dimension_numbers = #tpu.dot_dimension_numbers<[2], [1], [1], [2], [0, 0, 0, 1, 1, 2], [0], [0]>} : vector<2x8x8xbf16>, vector<2x8x16xbf16>, vector<2x8x16xf32> -> vector<2x8x16xf32>
    "tpu.trace_stop"() : () -> ()
    %63 = tpu.concatenate %41, %62 in 2 : vector<2x8x16xf32>, vector<2x8x16xf32> -> vector<2x8x32xf32>
    %64 = vector.shape_cast %63 : vector<2x8x32xf32> to vector<16x32xf32>
    %65 = arith.truncf %64 : vector<16x32xf32> to vector<16x32xbf16>
    %c0_20 = arith.constant 0 : index
    %c0_21 = arith.constant 0 : index
    %c0_22 = arith.constant 0 : index
    %66 = vector.load %arg7[%c0_20, %c0_21, %c0_22] : memref<1x32x32xbf16, #tpu.memory_space<vmem>>, vector<1x32x32xbf16>
    %67 = vector.shape_cast %66 : vector<1x32x32xbf16> to vector<32x32xbf16>
    %cst_23 = arith.constant dense<0.000000e+00> : vector<16x32xf32>
    %68 = tpu.matmul %65, %67, %cst_23 {dimension_numbers = #tpu.dot_dimension_numbers<[1], [0], [0], [1], [0, 0, 1, 1], [], []>} : vector<16x32xbf16>, vector<32x32xbf16>, vector<16x32xf32> -> vector<16x32xf32>
    %c0_24 = arith.constant 0 : index
    %c0_25 = arith.constant 0 : index
    %c0_26 = arith.constant 0 : index
    %69 = vector.load %arg8[%c0_24, %c0_25, %c0_26] : memref<1x1x32xf32, #tpu.memory_space<vmem>>, vector<1x1x32xf32>
    %70 = vector.shape_cast %69 : vector<1x1x32xf32> to vector<1x32xf32>
    %71 = vector.broadcast %70 : vector<1x32xf32> to vector<16x32xf32>
    %72 = arith.addf %68, %71 : vector<16x32xf32>
    %73 = arith.addf %11, %72 : vector<16x32xf32>
    %c0_27 = arith.constant 0 : index
    %c0_28 = arith.constant 0 : index
    %c0_29 = arith.constant 0 : index
    %74 = vector.load %arg9[%c0_27, %c0_28, %c0_29] : memref<1x1x32xf32, #tpu.memory_space<vmem>>, vector<1x1x32xf32>
    %75 = vector.shape_cast %74 : vector<1x1x32xf32> to vector<1x32xf32>
    %c0_30 = arith.constant 0 : index
    %c0_31 = arith.constant 0 : index
    %c0_32 = arith.constant 0 : index
    %76 = vector.load %arg10[%c0_30, %c0_31, %c0_32] : memref<1x1x32xf32, #tpu.memory_space<vmem>>, vector<1x1x32xf32>
    %77 = vector.shape_cast %76 : vector<1x1x32xf32> to vector<1x32xf32>
    %cst_33 = arith.constant dense<0.000000e+00> : vector<16xf32>
    %78 = vector.multi_reduction <add>, %73, %cst_33 [1] : vector<16x32xf32> to vector<16xf32>
    %79 = vector.shape_cast %78 : vector<16xf32> to vector<16x1xf32>
    %cst_34 = arith.constant 3.200000e+01 : f32
    %80 = vector.broadcast %cst_34 : f32 to vector<16x1xf32>
    %81 = arith.divf %79, %80 : vector<16x1xf32>
    %82 = vector.broadcast %81 : vector<16x1xf32> to vector<16x32xf32>
    %83 = arith.subf %73, %82 : vector<16x32xf32>
    %84 = arith.mulf %83, %83 : vector<16x32xf32>
    %cst_35 = arith.constant dense<0.000000e+00> : vector<16xf32>
    %85 = vector.multi_reduction <add>, %84, %cst_35 [1] : vector<16x32xf32> to vector<16xf32>
    %86 = vector.shape_cast %85 : vector<16xf32> to vector<16x1xf32>
    %cst_36 = arith.constant 3.200000e+01 : f32
    %87 = vector.broadcast %cst_36 : f32 to vector<16x1xf32>
    %88 = arith.divf %86, %87 : vector<16x1xf32>
    %89 = vector.broadcast %81 : vector<16x1xf32> to vector<16x32xf32>
    %90 = arith.subf %73, %89 : vector<16x32xf32>
    %cst_37 = arith.constant 9.99999996E-13 : f32
    %91 = vector.broadcast %cst_37 : f32 to vector<16x1xf32>
    %92 = arith.addf %88, %91 : vector<16x1xf32>
    %93 = math.rsqrt %92 : vector<16x1xf32>
    %94 = vector.broadcast %93 : vector<16x1xf32> to vector<16x32xf32>
    %95 = arith.mulf %90, %94 : vector<16x32xf32>
    %96 = vector.broadcast %75 : vector<1x32xf32> to vector<16x32xf32>
    %97 = arith.mulf %95, %96 : vector<16x32xf32>
    %98 = vector.broadcast %77 : vector<1x32xf32> to vector<16x32xf32>
    %99 = arith.addf %97, %98 : vector<16x32xf32>
    %100 = arith.truncf %99 : vector<16x32xf32> to vector<16x32xbf16>
    %c0_38 = arith.constant 0 : index
    %c0_39 = arith.constant 0 : index
    %c0_40 = arith.constant 0 : index
    %101 = vector.load %arg11[%c0_38, %c0_39, %c0_40] : memref<1x32x64xbf16, #tpu.memory_space<vmem>>, vector<1x32x64xbf16>
    %102 = vector.shape_cast %101 : vector<1x32x64xbf16> to vector<32x64xbf16>
    %cst_41 = arith.constant dense<0.000000e+00> : vector<16x64xf32>
    %103 = tpu.matmul %100, %102, %cst_41 {dimension_numbers = #tpu.dot_dimension_numbers<[1], [0], [0], [1], [0, 0, 1, 1], [], []>} : vector<16x32xbf16>, vector<32x64xbf16>, vector<16x64xf32> -> vector<16x64xf32>
    %c0_42 = arith.constant 0 : index
    %c0_43 = arith.constant 0 : index
    %c0_44 = arith.constant 0 : index
    %104 = vector.load %arg12[%c0_42, %c0_43, %c0_44] : memref<1x1x64xf32, #tpu.memory_space<vmem>>, vector<1x1x64xf32>
    %105 = vector.shape_cast %104 : vector<1x1x64xf32> to vector<1x64xf32>
    %106 = vector.broadcast %105 : vector<1x64xf32> to vector<16x64xf32>
    %107 = arith.addf %103, %106 : vector<16x64xf32>
    %108 = arith.mulf %107, %107 : vector<16x64xf32>
    %109 = arith.mulf %107, %108 : vector<16x64xf32>
    %cst_45 = arith.constant 4.471500e-02 : f32
    %110 = vector.broadcast %cst_45 : f32 to vector<16x64xf32>
    %111 = arith.mulf %110, %109 : vector<16x64xf32>
    %112 = arith.addf %107, %111 : vector<16x64xf32>
    %cst_46 = arith.constant 0.797884583 : f32
    %113 = vector.broadcast %cst_46 : f32 to vector<16x64xf32>
    %114 = arith.mulf %113, %112 : vector<16x64xf32>
    %115 = math.tanh %114 : vector<16x64xf32>
    %cst_47 = arith.constant 1.000000e+00 : f32
    %116 = vector.broadcast %cst_47 : f32 to vector<16x64xf32>
    %117 = arith.addf %116, %115 : vector<16x64xf32>
    %cst_48 = arith.constant 5.000000e-01 : f32
    %118 = vector.broadcast %cst_48 : f32 to vector<16x64xf32>
    %119 = arith.mulf %118, %117 : vector<16x64xf32>
    %120 = arith.mulf %107, %119 : vector<16x64xf32>
    %121 = arith.truncf %120 : vector<16x64xf32> to vector<16x64xbf16>
    %c0_49 = arith.constant 0 : index
    %c0_50 = arith.constant 0 : index
    %c0_51 = arith.constant 0 : index
    %122 = vector.load %arg13[%c0_49, %c0_50, %c0_51] : memref<1x64x32xbf16, #tpu.memory_space<vmem>>, vector<1x64x32xbf16>
    %123 = vector.shape_cast %122 : vector<1x64x32xbf16> to vector<64x32xbf16>
    %cst_52 = arith.constant dense<0.000000e+00> : vector<16x32xf32>
    %124 = tpu.matmul %121, %123, %cst_52 {dimension_numbers = #tpu.dot_dimension_numbers<[1], [0], [0], [1], [0, 0, 1, 1], [], []>} : vector<16x64xbf16>, vector<64x32xbf16>, vector<16x32xf32> -> vector<16x32xf32>
    %c0_53 = arith.constant 0 : index
    %c0_54 = arith.constant 0 : index
    %c0_55 = arith.constant 0 : index
    %125 = vector.load %arg14[%c0_53, %c0_54, %c0_55] : memref<1x1x32xf32, #tpu.memory_space<vmem>>, vector<1x1x32xf32>
    %126 = vector.shape_cast %125 : vector<1x1x32xf32> to vector<1x32xf32>
    %127 = vector.broadcast %126 : vector<1x32xf32> to vector<16x32xf32>
    %128 = arith.addf %124, %127 : vector<16x32xf32>
    %129 = arith.addf %99, %128 : vector<16x32xf32>
    %c0_56 = arith.constant 0 : index
    %c0_57 = arith.constant 0 : index
    %c0_58 = arith.constant 0 : index
    %130 = vector.load %arg15[%c0_56, %c0_57, %c0_58] : memref<1x1x32xf32, #tpu.memory_space<vmem>>, vector<1x1x32xf32>
    %131 = vector.shape_cast %130 : vector<1x1x32xf32> to vector<1x32xf32>
    %c0_59 = arith.constant 0 : index
    %c0_60 = arith.constant 0 : index
    %c0_61 = arith.constant 0 : index
    %132 = vector.load %arg16[%c0_59, %c0_60, %c0_61] : memref<1x1x32xf32, #tpu.memory_space<vmem>>, vector<1x1x32xf32>
    %133 = vector.shape_cast %132 : vector<1x1x32xf32> to vector<1x32xf32>
    %cst_62 = arith.constant dense<0.000000e+00> : vector<16xf32>
    %134 = vector.multi_reduction <add>, %129, %cst_62 [1] : vector<16x32xf32> to vector<16xf32>
    %135 = vector.shape_cast %134 : vector<16xf32> to vector<16x1xf32>
    %cst_63 = arith.constant 3.200000e+01 : f32
    %136 = vector.broadcast %cst_63 : f32 to vector<16x1xf32>
    %137 = arith.divf %135, %136 : vector<16x1xf32>
    %138 = vector.broadcast %137 : vector<16x1xf32> to vector<16x32xf32>
    %139 = arith.subf %129, %138 : vector<16x32xf32>
    %140 = arith.mulf %139, %139 : vector<16x32xf32>
    %cst_64 = arith.constant dense<0.000000e+00> : vector<16xf32>
    %141 = vector.multi_reduction <add>, %140, %cst_64 [1] : vector<16x32xf32> to vector<16xf32>
    %142 = vector.shape_cast %141 : vector<16xf32> to vector<16x1xf32>
    %cst_65 = arith.constant 3.200000e+01 : f32
    %143 = vector.broadcast %cst_65 : f32 to vector<16x1xf32>
    %144 = arith.divf %142, %143 : vector<16x1xf32>
    %145 = vector.broadcast %137 : vector<16x1xf32> to vector<16x32xf32>
    %146 = arith.subf %129, %145 : vector<16x32xf32>
    %cst_66 = arith.constant 9.99999996E-13 : f32
    %147 = vector.broadcast %cst_66 : f32 to vector<16x1xf32>
    %148 = arith.addf %144, %147 : vector<16x1xf32>
    %149 = math.rsqrt %148 : vector<16x1xf32>
    %150 = vector.broadcast %149 : vector<16x1xf32> to vector<16x32xf32>
    %151 = arith.mulf %146, %150 : vector<16x32xf32>
    %152 = vector.broadcast %131 : vector<1x32xf32> to vector<16x32xf32>
    %153 = arith.mulf %151, %152 : vector<16x32xf32>
    %154 = vector.broadcast %133 : vector<1x32xf32> to vector<16x32xf32>
    %155 = arith.addf %153, %154 : vector<16x32xf32>
    %c0_67 = arith.constant 0 : index
    %c0_68 = arith.constant 0 : index
    %156 = vector.load %arg19[%c0_67, %c0_68] : memref<16x32xf32, #tpu.memory_space<vmem>>, vector<16x32xf32>
    tpu.vector_store %arg19[%c0_67, %c0_68], %155 {strides = array<i32>} : memref<16x32xf32, #tpu.memory_space<vmem>>, vector<16x32xf32>,
    %c0_69 = arith.constant 0 : index
    %c0_70 = arith.constant 0 : index
    %157 = tpu.strided_load %arg19[%c0_69, %c0_70] {strides = array<i32: 8, 1>} : memref<16x32xf32, #tpu.memory_space<vmem>>, vector<2x32xf32>
    %158 = arith.truncf %157 : vector<2x32xf32> to vector<2x32xbf16>
    %c0_71 = arith.constant 0 : index
    %c0_72 = arith.constant 0 : index
    %159 = vector.load %arg17[%c0_71, %c0_72] : memref<32x16xbf16, #tpu.memory_space<vmem>>, vector<32x16xbf16>
    %cst_73 = arith.constant dense<0.000000e+00> : vector<2x16xf32>
    %160 = tpu.matmul %158, %159, %cst_73 {dimension_numbers = #tpu.dot_dimension_numbers<[1], [0], [0], [1], [0, 0, 1, 1], [], []>} : vector<2x32xbf16>, vector<32x16xbf16>, vector<2x16xf32> -> vector<2x16xf32>
    %c0_74 = arith.constant 0 : index
    %c0_75 = arith.constant 0 : index
    %161 = vector.load %arg18[%c0_74, %c0_75] : memref<2x16xf32, #tpu.memory_space<vmem>>, vector<2x16xf32>
    tpu.vector_store %arg18[%c0_74, %c0_75], %160 {strides = array<i32>} : memref<2x16xf32, #tpu.memory_space<vmem>>, vector<2x16xf32>,
    return
  }
  func.func @transform_0(%arg0: i32) -> (i32, i32) {
    %c0_i32 = arith.constant 0 : i32
    %c0_i32_0 = arith.constant 0 : i32
    %c0_i32_1 = arith.constant 0 : i32
    return %c0_i32, %c0_i32_0 : i32, i32
  }
  func.func @transform_1(%arg0: i32) -> (i32, i32) {
    %c0_i32 = arith.constant 0 : i32
    %c0_i32_0 = arith.constant 0 : i32
    %c0_i32_1 = arith.constant 0 : i32
    return %c0_i32, %c0_i32_0 : i32, i32
  }
  func.func @transform_2(%arg0: i32) -> (i32, i32) {
    %c0_i32 = arith.constant 0 : i32
    %c0_i32_0 = arith.constant 0 : i32
    %c0_i32_1 = arith.constant 0 : i32
    return %c0_i32, %c0_i32_0 : i32, i32
  }
  func.func @transform_3(%arg0: i32) -> (i32, i32) {
    %c0_i32 = arith.constant 0 : i32
    %c0_i32_0 = arith.constant 0 : i32
    %c0_i32_1 = arith.constant 0 : i32
    return %c0_i32, %c0_i32_0 : i32, i32
  }
  func.func @transform_4(%arg0: i32) -> (i32, i32, i32) {
    %c0_i32 = arith.constant 0 : i32
    %c0_i32_0 = arith.constant 0 : i32
    %c0_i32_1 = arith.constant 0 : i32
    return %arg0, %c0_i32, %c0_i32_0 : i32, i32, i32
  }
  func.func @transform_5(%arg0: i32) -> (i32, i32, i32) {
    %c0_i32 = arith.constant 0 : i32
    %c0_i32_0 = arith.constant 0 : i32
    %c0_i32_1 = arith.constant 0 : i32
    return %arg0, %c0_i32, %c0_i32_0 : i32, i32, i32
  }
  func.func @transform_6(%arg0: i32) -> (i32, i32, i32) {
    %c0_i32 = arith.constant 0 : i32
    %c0_i32_0 = arith.constant 0 : i32
    %c0_i32_1 = arith.constant 0 : i32
    return %arg0, %c0_i32, %c0_i32_0 : i32, i32, i32
  }
  func.func @transform_7(%arg0: i32) -> (i32, i32, i32) {
    %c0_i32 = arith.constant 0 : i32
    %c0_i32_0 = arith.constant 0 : i32
    %c0_i32_1 = arith.constant 0 : i32
    return %arg0, %c0_i32, %c0_i32_0 : i32, i32, i32
  }
  func.func @transform_8(%arg0: i32) -> (i32, i32, i32) {
    %c0_i32 = arith.constant 0 : i32
    %c0_i32_0 = arith.constant 0 : i32
    %c0_i32_1 = arith.constant 0 : i32
    return %arg0, %c0_i32, %c0_i32_0 : i32, i32, i32
  }
  func.func @transform_9(%arg0: i32) -> (i32, i32, i32) {
    %c0_i32 = arith.constant 0 : i32
    %c0_i32_0 = arith.constant 0 : i32
    %c0_i32_1 = arith.constant 0 : i32
    return %arg0, %c0_i32, %c0_i32_0 : i32, i32, i32
  }
  func.func @transform_10(%arg0: i32) -> (i32, i32, i32) {
    %c0_i32 = arith.constant 0 : i32
    %c0_i32_0 = arith.constant 0 : i32
    %c0_i32_1 = arith.constant 0 : i32
    return %arg0, %c0_i32, %c0_i32_0 : i32, i32, i32
  }
  func.func @transform_11(%arg0: i32) -> (i32, i32, i32) {
    %c0_i32 = arith.constant 0 : i32
    %c0_i32_0 = arith.constant 0 : i32
    %c0_i32_1 = arith.constant 0 : i32
    return %arg0, %c0_i32, %c0_i32_0 : i32, i32, i32
  }
  func.func @transform_12(%arg0: i32) -> (i32, i32, i32) {
    %c0_i32 = arith.constant 0 : i32
    %c0_i32_0 = arith.constant 0 : i32
    %c0_i32_1 = arith.constant 0 : i32
    return %arg0, %c0_i32, %c0_i32_0 : i32, i32, i32
  }
  func.func @transform_13(%arg0: i32) -> (i32, i32, i32) {
    %c0_i32 = arith.constant 0 : i32
    %c0_i32_0 = arith.constant 0 : i32
    %c0_i32_1 = arith.constant 0 : i32
    return %arg0, %c0_i32, %c0_i32_0 : i32, i32, i32
  }
  func.func @transform_14(%arg0: i32) -> (i32, i32, i32) {
    %c0_i32 = arith.constant 0 : i32
    %c0_i32_0 = arith.constant 0 : i32
    %c0_i32_1 = arith.constant 0 : i32
    return %arg0, %c0_i32, %c0_i32_0 : i32, i32, i32
  }
  func.func @transform_15(%arg0: i32) -> (i32, i32, i32) {
    %c0_i32 = arith.constant 0 : i32
    %c0_i32_0 = arith.constant 0 : i32
    %c0_i32_1 = arith.constant 0 : i32
    return %arg0, %c0_i32, %c0_i32_0 : i32, i32, i32
  }
  func.func @transform_16(%arg0: i32) -> (i32, i32) {
    %c0_i32 = arith.constant 0 : i32
    %c0_i32_0 = arith.constant 0 : i32
    %c0_i32_1 = arith.constant 0 : i32
    return %c0_i32, %c0_i32_0 : i32, i32
  }
  func.func @transform_17(%arg0: i32) -> (i32, i32) {
    %c0_i32 = arith.constant 0 : i32
    %c0_i32_0 = arith.constant 0 : i32
    %c0_i32_1 = arith.constant 0 : i32
    return %c0_i32, %c0_i32_0 : i32, i32
  }
}

</mosaic_0001>

<bundles_post_ra>
// kernel: tpu_custom_call.1
= control target key start
LH: loop header
LB: loop body
LE: loop exit
PB: predicated region body
PF: predicated region fallthrough
CT: control target
= control target key end

     0   :  { %s2686_s0 = inlined_call_operand.vmem [shape: s32[2,1], index: 0, kind: input, shape index: {}]   ;;  %s2687_s1 = inlined_call_operand.vmem [shape: f32[16,32], index: 1, kind: input, shape index: {}]   ;;  %s2688_s2 = inlined_call_operand.vmem [shape: f32[1,32], index: 2, kind: input, shape index: {}]   ;;  %s2689_s3 = inlined_call_operand.hbm [shape: f32[1,32], index: 3, kind: input, shape index: {}]   ;;  %s2690_s4 = inlined_call_operand.vmem [shape: bf16[2,32,96], index: 4, kind: input, shape index: {}]   ;;  %s2691_s5 = inlined_call_operand.vmem [shape: f32[2,1,96], index: 5, kind: input, shape index: {}]   ;;  %s2692_s6 = inlined_call_operand.vmem [shape: bf16[2,32,32], index: 6, kind: input, shape index: {}]   ;;  %s2693_s7 = inlined_call_operand.vmem [shape: f32[2,1,32], index: 7, kind: input, shape index: {}]   ;;  %s2694_s8 = inlined_call_operand.vmem [shape: f32[2,1,32], index: 8, kind: input, shape index: {}]   ;;  %s2695_s9 = inlined_call_operand.vmem [shape: f32[2,1,32], index: 9, kind: input, shape index: {}]   ;;  %s2696_s10 = inlined_call_operand.vmem [shape: bf16[2,32,64], index: 10, kind: input, shape index: {}]   ;;  %s2697_s11 = inlined_call_operand.vmem [shape: f32[2,1,64], index: 11, kind: input, shape index: {}]   ;;  %s2698_s12 = inlined_call_operand.vmem [shape: bf16[2,64,32], index: 12, kind: input, shape index: {}]   ;;  %s2699_s13 = inlined_call_operand.vmem [shape: f32[2,1,32], index: 13, kind: input, shape index: {}]   ;;  %s2700_s14 = inlined_call_operand.vmem [shape: f32[2,1,32], index: 14, kind: input, shape index: {}]   ;;  %s2701_s15 = inlined_call_operand.vmem [shape: f32[2,1,32], index: 15, kind: input, shape index: {}]   ;;  %s2702_s16 = inlined_call_operand.vmem [shape: bf16[32,16], index: 16, kind: input, shape index: {}]   ;;  %s2703_s17 = inlined_call_operand.hbm [shape: f32[2,16], index: 17, kind: output, shape index: {}]  }
   0x1   :  { %2711 = sst [smem:[#allocation11_spill]] %s2686_s0 }
   0x2   :  { %2712 = sst [smem:[#allocation12_spill]] %s2687_s1 }
   0x3   :  { %2713 = sst [smem:[#allocation13_spill]] %s2689_s3 }
   0x4   :  { %2714 = sst [smem:[#allocation14_spill]] %s2690_s4 }
   0x5   :  { %2715 = sst [smem:[#allocation15_spill]] %s2692_s6 }
   0x6   :  { %2716 = sst [smem:[#allocation16_spill]] %s2702_s16 }
   0x7   :  { %2717 = sst [smem:[#allocation17_spill]] %s2703_s17 }
   0x8   :  { %22 = vsyncpa [#allocation4], 0 }
   0x9   :  { %23 = vsyncpa [#allocation5], 0  ;;  %s2356_s24 = smov 0  }
   0xa LB: > { %2718 = sst [smem:[#allocation9_spill]] %s2251_s24  ;;  %s2362_s25 = sadd.s32 4294967295, %s2251_s24   ;;  %s2251_s24 = sphi %s2356_s24, %s29_s24  }
   0xb   : > { %p1908_p0 = scmp.ge.s32.totalorder %s2251_s24, 1  ;;  %p472_p1 = scmp.lt.s32.totalorder %s2251_s24, 3 }
   0xc   : > { %p2705_p4 = scmp.eq.s32.totalorder %s2362_s25, 0  ;;  %s2253_s27 = smov [#allocation3]  }
   0xd   : > { %p2367_p3 = pnand %p1908_p0, %p472_p1  ;;  %s494_s28 = sshll.u32 %s2253_s27, 4  ;;  %s495_s28 = int_to_ptr.vmem [resolvable:$true] %s494_s28 }
   0xe   : > { %s2721_s3 = sld [smem:[#allocation13_spill]] }
   0xf   : > { %s2719_s26 = scalar_select %p2367_p3, 1, 0 }
  0x10   : > { %p2103_p5 = pneg %p2367_p3 }
  0x12   : > { %p2376_p6 = pnand %p2705_p4, %p2103_p5 }
  0x14   : > { %s2183_s18 = scalar_lea.hbm %s2721_s3, 16  ;;  %p2185_p8 = pneg %p2376_p6 }
  0x15   : > { %p2184_p7 = scmp.ne.s32.totalorder %s2721_s3, %s2183_s18  ;;  %p2190_p11 = scmp.lt.u32.totalorder %s2183_s18, %s2721_s3 }
  0x17   : > { %p2186_p9 = pnand %p2185_p8, %p2184_p7 }
  0x19   : > { %p2187_p10 = pneg %p2186_p9 }
  0x1b   : > { %p2192_p12 = pnand %p2190_p11, %p2187_p10 }
  0x1d   : > { %2195 = shalt.err (!%p2192_p12)
}
  0x1e   : > { %s2196_s22 = scalar_lea.vmem %s495_s28, 16  ;;  %s2203_s23 = scalar_lea.vmem %s495_s28, 32 }
  0x1f   : > { %p2197_p13 = scmp.ne.s32.totalorder %s495_s28, %s2196_s22  ;;  %p2204_p5 = scmp.lt.s32.totalorder %s495_s28, %s495_s28 }
  0x20   : > { %p2205_p2 = scmp.lt.s32.totalorder %s2203_s23, %s2196_s22 }
  0x21   : > { %p2199_p0 = pnand %p2197_p13, %p2185_p8 }
  0x22   : > { %p2206_p4 = por %p2205_p2, %p2204_p5 }
  0x23   : > { %p2200_p1 = pneg %p2199_p0 }
  0x25   : > { %p2207_p3 = pnand %p2206_p4, %p2200_p1 }
  0x27   : > { %2210 = shalt.err (!%p2207_p3)
}
  0x28   : > { %2106 = dma.hbm_to_vmem [thread:$0]  (!%p2376_p6), %s2721_s3, 16, %s495_s28, [#allocation4]  }
  0x29   : > { %p2722_p7 = scmp.ne.s32.totalorder %s2719_s26, 0 }
  0x2b   : > { %590 = sbr.rel (%p2722_p7) target bundleno = 3688 (0xe68), region = 88 }
  0x32   : > { %p2723_p9 = scmp.eq.s32.totalorder %s2362_s25, 0 }
  0x34   : > { %2242 = dma.done.wait (%p2723_p9), [#allocation4], 16   ;;  %p2724_p8 = pmov %p2723_p9 }
  0x35   : > { %p676_p2 = scmp.lt.s32.totalorder %s2362_s25, 1  ;;  %s2725_s4 = sld [smem:[#allocation14_spill]] }
  0x36   : > { %2244 = vsyncadd (%p2724_p8), [#allocation4], 4294967280  ;;  %s2726_s6 = sld [smem:[#allocation15_spill]]  ;;  %p2728_p3 = scmp.ne.s32.totalorder %s2362_s25, 0 }
  0x37   : > { %s2404_s30 = scalar_select %p676_p2, %s2362_s25, 1 }
  0x38   : > { %724 = sbr.rel (%p2728_p3) target bundleno = 381 (0x17d), region = 96  ;;  %s2729_s27 = sld [smem:[#allocation12_spill]] (!%p2728_p3)  ;;  %vm729_vm0 = vcmask (!%p2728_p3), 261120   ;;  %v1922_v21 = vld [vmem:[%s2688_s2] ss:$0 sm:$0xff] (!%p2728_p3) }
  0x39   : > { %s1964_s26 = sshll.u32 %s2404_s30, 4  ;;  %s713_s28 = scalar_lea.vmem %s2699_s13, %s2404_s30  ;;  %v1923_v23 = vld [vmem:[#allocation3] ss:$0 sm:$0xff] (!%p2728_p3) }
  0x3a   : > { %s716_s19 = scalar_lea.vmem %s2700_s14, %s2404_s30  ;;  %s719_s16 = scalar_lea.vmem %s2701_s15, %s2404_s30 }
  0x3b   : > { %s2414_s20 = scalar_lea.vmem %s2725_s4, %s1964_s26  ;;  %s2436_s4 = scalar_lea.vmem %s2696_s10, %s1964_s26 }
  0x3c   : > { %s2419_s23 = scalar_lea.vmem %s2726_s6, %s1964_s26  ;;  %s705_s6 = scalar_lea.vmem %s2697_s11, %s2404_s30 }
  0x3d   : > { %2727 = sst [smem:[#allocation10_spill]] %s2419_s23  ;;  %s1967_s23 = sshll.u32 %s2404_s30, 5 }
  0x3e   : > { %s2446_s3 = scalar_lea.vmem %s2698_s12, %s1967_s23  ;;  %v725_v0 = vld [vmem:[%s2729_s27] sm:$0xff] (!%p2728_p3)  ;;  %v726_v1 = vld [vmem:[%s2729_s27 + $0x8] sm:$0xff] (!%p2728_p3) }
  0x3f   : > { %v730_v2 = vsel %vm729_vm0, %v725_v0, 0.0  ;;  %v733_v3 = vsel %vm729_vm0, %v726_v1, 0.0 }
  0x40   : > { %731 = vadd.xlane.f32.xlu0 %v730_v2 }
  0x44   : > { %734 = vadd.xlane.f32.xlu0 %v733_v3 }
  0xcd   : > { %v732_v4 = vpop.xlane.xlu0 %731 }
  0xce   : > { %v737_v5 = vmul.f32 0.03125, %v732_v4 }
  0xd0   : > { %v739_v6 = vsub.f32 %v725_v0, %v737_v5 }
  0xd1   : > { %v735_v7 = vpop.xlane.xlu0 %734 }
  0xd2   : > { %v738_v8 = vmul.f32 0.03125, %v735_v7  ;;  %v741_v9 = vmul.f32 %v739_v6, %v739_v6 }
  0xd4   : > { %v740_v10 = vsub.f32 %v726_v1, %v738_v8  ;;  %v743_v11 = vsel %vm729_vm0, %v741_v9, 0.0 }
  0xd5   : > { %744 = vadd.xlane.f32.xlu1 %v743_v11 }
  0xd6   : > { %v742_v12 = vmul.f32 %v740_v10, %v740_v10 }
  0xd8   : > { %v746_v13 = vsel %vm729_vm0, %v742_v12, 0.0 }
  0xd9   : > { %747 = vadd.xlane.f32.xlu1 %v746_v13 }
 0x162   : > { %v745_v14 = vpop.xlane.xlu1 %744 }
 0x163   : > { %v749_v15 = vmul.f32 0.03125, %v745_v14 }
 0x165   : > { %v751_v16 = vadd.f32 1e-12, %v749_v15 }
 0x166   : > { %v748_v17 = vpop.xlane.xlu1 %747 }
 0x167   : > { %2132 = vrsqrt.f32 %v751_v16  ;;  %v750_v18 = vmul.f32 0.03125, %v748_v17 }
 0x169   : > { %v752_v19 = vadd.f32 1e-12, %v750_v18 }
 0x16b   : > { %2134 = vrsqrt.f32 %v752_v19 }
 0x171   : > { %v2133_v20 = vpop.eup %2132 }
 0x172   : > { %v755_v22 = vmul.f32 %v2133_v20, %v739_v6 }
 0x174   : > { %v763_v24 = vmul.f32 %v1922_v21, %v755_v22 }
 0x175   : > { %v2135_v25 = vpop.eup %2134 }
 0x176   : > { %v771_v26 = vadd.f32 %v1923_v23, %v763_v24  ;;  %v756_v27 = vmul.f32 %v2135_v25, %v740_v10 }
 0x178   : > { %773 = vst.msk [vmem:[#allocation2] sm:$0xff] %vm729_vm0, %v771_v26  ;;  %v764_v28 = vmul.f32 %v1922_v21, %v756_v27 }
 0x17a   : > { %v772_v29 = vadd.f32 %v1923_v23, %v764_v28 }
 0x17c   : > { %774 = vst.msk [vmem:[#allocation2 + $0x8] sm:$0xff] %vm729_vm0, %v772_v29 }
 0x17d PF: > { %v2143_v30 = vld [vmem:[%s2414_s20] sm:$0xff]   ;;  %v2254_v31 = vmov 0.0   ;;  %v2144_v32 = vld [vmem:[%s2414_s20 + $0x8] sm:$0xff]   ;;  %vm2255_vm1 = vmmov 0   ;;  %vm844_vm2 = vcmask 261120   ;;  %s2730_s29 = scalar_lea.vmem %s2691_s5, %s2404_s30  ;;  %v775_v44 = vlaneseq  ;;  %s2256_s26 = smov 96  }
 0x17e   : > { %2003 = vmatprep.subr.bf16.mxu0 %v2254_v31  ;;  %2011 = vmatprep.subr.bf16.mxu1 %v2254_v31  ;;  %v1925_v36 = vld [vmem:[%s2730_s29] ss:$0 sm:$0xff]  ;;  %v2257_v45 = vmov 0   ;;  %v2258_v46 = vmov 1966171168   ;;  %s2731_s22 = sld [smem:[#allocation11_spill]]  ;;  %s2733_s1 = scalar_lea.vmem %s2693_s7, %s2404_s30 }
 0x17f   : > { %2004 = vmatpush3.bf16.msra.mxu0 %v2143_v30  ;;  %2007 = vmatprep.mubr.msk.bf16.mxu0 %vm2255_vm1, %v2254_v31  ;;  %v2483_v33 = vld [vmem:[#allocation2] sm:$0xff]  ;;  %v787_v47 = vunpack.c.l.s4 %v2258_v46  ;;  %v790_v48 = vshrl.u32 %v775_v44, 7  ;;  %vm897_vm3 = vcmask 130048   ;;  %v776_v61 = vand.u32 127, %v775_v44  ;;  %s2260_s23 = smov 64   ;;  %s2261_s0 = smov 80  }
 0x180   : > { %2005 = vmatprep.subr.bf16.mxu0 %v2254_v31  ;;  %2013 = vmatprep.mubr.msk.bf16.mxu1 %vm2255_vm1, %v2254_v31  ;;  %v2259_v2 = vmov -1e+09   ;;  %vm992_vm6 = vcmask 64512   ;;  %s2262_s18 = smov 112   ;;  %vm1022_vm7 = vcmask 1043456   ;;  %s2263_s17 = smov 48  }
 0x181   : > { %2136 = vset.pattern.permute.xlu1 %v2257_v45  ;;  %2142 = vset.pattern.permute.xlu0 %v2257_v45  ;;  %v788_v50 = vunpack.c.0.s8 %v787_v47  ;;  %v805_v60 = vsub.s32 0, %v790_v48  ;;  %s2732_s20 = sld [smem:[#allocation10_spill]]  ;;  %s2264_s24 = smov 16   ;;  %vm1585_vm8 = vcmask 523264   ;;  %vm1739_vm9 = vcmask 123904  }
 0x182   : > { %s2736_s29 = sld [smem:[#allocation16_spill]]  ;;  %p2109_p4 = scmp.eq.s32.totalorder %s2362_s25, 1 }
 0x183   : > { %v2485_v34 = vld [vmem:[#allocation2 + $0x8] sm:$0xff]  ;;  %2006 = vmatpush3.bf16.msra.mxu0 %v2144_v32  ;;  %v791_v53 = vsub.s32 %v788_v50, %v790_v48 }
 0x184   : > { %v820_v35 = vpack.c.bf16 %v2485_v34, %v2483_v33  ;;  %2017 = vmatprep.subr.bf16.mxu0 %v2254_v31  ;;  %v1924_v51 = vld.sshfl [vmem:[%s2731_s22] sm:$0x11 pattern:$0x75316420] }
 0x185   : > { %v785_v52 = vcombine.high %v1924_v51, %v1924_v51  ;;  %v792_v54 = vrot.slane %v1924_v51, %v791_v53 }
 0x186   : > { %2008 = vmatmul.mubr.msk.bf16.vlgmr.msra.gmra.mrb[0].mxu0 %vm844_vm2, %v820_v35 }
 0x187   : > { %2019 = vmatprep.mubr.msk.bf16.mxu0 %vm2255_vm1, %v2254_v31  ;;  %801 = vperm.xlu1 %2136, %v792_v54   ;;  %v799_v55 = vrot.slane %v785_v52, %v791_v53 }
 0x18b   : > { %808 = vperm.xlu1 %2136, %v799_v55  }
 0x206   : > { %v802_v62 = vpop.permute.xlu1 %801 }
 0x207   : > { %v806_v63 = vrot.slane %v802_v62, %v805_v60 }
 0x209   : > { %vm814_vm4 = vcmp.lt.s32.totalorder %v776_v61, %v806_v63 }
 0x20a   : > { %v809_v0 = vpop.permute.xlu1 %808  ;;  %v2522_v3 = vsel %vm814_vm4, 0.0, %v2259_v2 }
 0x20b   : > { %v813_v1 = vrot.slane %v809_v0, %v805_v60 }
 0x20d   : > { %vm815_vm5 = vcmp.lt.s32.totalorder %v776_v61, %v813_v1 }
 0x20e   : > { %v2526_v10 = vsel %vm815_vm5, 0.0, %v2259_v2 }
 0x259   : > { %v882_v37 = vpop.f32.mrb[0].mxu0 }
 0x25a   : > { %v883_v38 = vadd.f32 %v1925_v36, %v882_v37  ;;  %v2009_v39 = vpop.f32.mrb[1].mxu0 }
 0x25b   : > { %v885_v40 = vpop.f32.mrb[2].mxu0 }
 0x25c   : > { %v2501_v41 = vpack.c.bf16 %v883_v38, %v883_v38  ;;  %v886_v42 = vadd.f32 %v1925_v36, %v885_v40  ;;  %v2010_v43 = vpop.f32.mrb[3].mxu0 }
 0x25e   : > { %895 = vrot.lane.b32.xlu0 %v2501_v41, %s2256_s26  ;;  %v2504_v49 = vpack.c.bf16 %v886_v42, %v886_v42 }
 0x262   : > { %944 = vrot.lane.b32.xlu0 %v2504_v49, %s2256_s26 }
 0x2d0   : > { %v896_v56 = vpop.permute.xlu0 %895 }
 0x2d1   : > { %v902_v57 = vsel %vm897_vm3, %v896_v56, 0 }
 0x2d2   : > { %2012 = vmatpush3.bf16.xpose.msra.mxu1 %v902_v57 }
 0x2d3   : > { %2023 = vmatprep.subr.bf16.mxu1 %v2254_v31 }
 0x2d4   : > { %v945_v58 = vpop.permute.xlu0 %944 }
 0x2d5   : > { %v950_v59 = vsel %vm897_vm3, %v945_v58, 0 }
 0x2d6   : > { %2018 = vmatpush3.bf16.xpose.msra.mxu0 %v950_v59 }
 0x2d7   : > { %2029 = vmatprep.subr.bf16.mxu0 %v2254_v31 }
 0x2d9   : > { %2014 = vmatmul.mubr.msk.bf16.vlgmr.msra.gmra.mrb[0].mxu1 %vm897_vm3, %v2501_v41 }
 0x2da   : > { %2025 = vmatprep.mubr.msk.bf16.mxu1 %vm2255_vm1, %v2254_v31 }
 0x2dd   : > { %2020 = vmatmul.mubr.msk.bf16.vlgmr.msra.gmra.mrb[4].mxu0 %vm897_vm3, %v2504_v49 }
 0x2de   : > { %2031 = vmatprep.mubr.msk.bf16.mxu0 %vm2255_vm1, %v2254_v31 }
 0x3ac   : > { %v938_v4 = vpop.f32.mrb[0].mxu1 }
 0x3ad   : > { %v939_v5 = vadd.f32 %v938_v4, %v2522_v3  ;;  %v2015_v6 = vpop.f32.mrb[1].mxu1 }
 0x3ae   : > { %v941_v7 = vpop.f32.mrb[2].mxu1 }
 0x3af   : > { %v2016_v8 = vpop.f32.mrb[3].mxu1  ;;  %v993_v9 = vsel %vm992_vm6, %v939_v5, -inf }
 0x3b0   : > { %v986_v11 = vpop.f32.mrb[4].mxu0  ;;  %994 = vmax.xlane.f32.xlu0 %v993_v9 }
 0x3b1   : > { %v987_v12 = vadd.f32 %v986_v11, %v2526_v10  ;;  %v2021_v13 = vpop.f32.mrb[5].mxu0 }
 0x3b2   : > { %v989_v14 = vpop.f32.mrb[6].mxu0 }
 0x3b3   : > { %v2022_v15 = vpop.f32.mrb[7].mxu0  ;;  %v996_v16 = vsel %vm992_vm6, %v987_v12, -inf }
 0x3b4   : > { %997 = vmax.xlane.f32.xlu1 %v996_v16 }
 0x3c5   : > { %1017 = vrot.lane.b32.xlu1 %v2501_v41, %s2260_s23 }
 0x3c9   : > { %1116 = vrot.lane.b32.xlu1 %v2501_v41, %s2261_s0 }
 0x3cd   : > { %1166 = vrot.lane.b32.xlu1 %v2504_v49, %s2261_s0 }
 0x3d1   : > { %1164 = vrot.lane.b32.xlu1 %v2504_v49, %s2262_s18 }
 0x43d   : > { %v995_v17 = vpop.xlane.xlu0 %994 }
 0x43e   : > { %v999_v18 = vsub.f32 %v939_v5, %v995_v17 }
 0x440   : > { %v1001_v19 = vmul.f32 1.442695, %v999_v18 }
 0x441   : > { %v998_v20 = vpop.xlane.xlu1 %997 }
 0x442   : > { %2155 = vpow2.f32 %v1001_v19  ;;  %v1000_v21 = vsub.f32 %v987_v12, %v998_v20 }
 0x444   : > { %v1003_v22 = vmul.f32 1.442695, %v1000_v21 }
 0x445   : > { %v1018_v23 = vpop.permute.xlu1 %1017 }
 0x446   : > { %2157 = vpow2.f32 %v1003_v22  ;;  %v1024_v24 = vsel %vm1022_vm7, %v1018_v23, 0 }
 0x447   : > { %2024 = vmatpush3.bf16.msra.mxu1 %v1024_v24 }
 0x448   : > { %2035 = vmatprep.subr.bf16.mxu1 %v2254_v31 }
 0x449   : > { %v1117_v37 = vpop.permute.xlu1 %1116 }
 0x44a   : > { %v1122_v42 = vsel %vm897_vm3, %v1117_v37, 0 }
 0x44c   : > { %v2156_v25 = vpop.eup %2155 }
 0x44d   : > { %v1005_v26 = vsel %vm992_vm6, %v2156_v25, 0.0  ;;  %v1167_v44 = vpop.permute.xlu1 %1166 }
 0x44e   : > { %1006 = vadd.xlane.f32.xlu0 %v1005_v26  ;;  %v1172_v46 = vsel %vm897_vm3, %v1167_v44, 0  ;;  %v2145_v26 = vld [vmem:[%s2732_s20] sm:$0xff]  }
 0x450   : > { %v2158_v27 = vpop.eup %2157 }
 0x451   : > { %v1008_v28 = vsel %vm992_vm6, %v2158_v27, 0.0  ;;  %v1165_v48 = vpop.permute.xlu1 %1164 }
 0x452   : > { %1009 = vadd.xlane.f32.xlu0 %v1008_v28 }
 0x468   : > { %1066 = vrot.lane.b32.xlu0 %v2504_v49, %s2260_s23 }
 0x46c   : > { %1114 = vrot.lane.b32.xlu0 %v2501_v41, %s2262_s18  ;;  %s2735_s18 = scalar_lea.vmem %s2695_s9, %s2404_s30 }
 0x4db   : > { %v1007_v29 = vpop.xlane.xlu0 %1006 }
 0x4dc   : > { %2159 = vrcp.f32 %v1007_v29 }
 0x4df   : > { %v1010_v30 = vpop.xlane.xlu0 %1009 }
 0x4e0   : > { %2161 = vrcp.f32 %v1010_v30 }
 0x4e3   : > { %v1067_v32 = vpop.permute.xlu0 %1066 }
 0x4e4   : > { %v1072_v35 = vsel %vm1022_vm7, %v1067_v32, 0 }
 0x4e5   : > { %2030 = vmatpush3.bf16.msra.mxu0 %v1072_v35 }
 0x4e6   : > { %v2160_v36 = vpop.eup %2159  ;;  %2041 = vmatprep.subr.bf16.mxu0 %v2254_v31 }
 0x4e7   : > { %v1013_v38 = vmul.f32 %v2160_v36, %v2156_v25  ;;  %v1115_v47 = vpop.permute.xlu0 %1114 }
 0x4e9   : > { %v1015_v39 = vpack.c.bf16 %v1013_v38, %v1013_v38 }
 0x4ea   : > { %v2162_v40 = vpop.eup %2161 }
 0x4eb   : > { %v1014_v43 = vmul.f32 %v2162_v40, %v2158_v27  ;;  %2026 = vmatmul.mubr.msk.bf16.vlgmr.msra.gmra.mrb[4].mxu1 %vm992_vm6, %v1015_v39  ;;  %v2146_v27 = vld [vmem:[%s2732_s20 + $0x8] sm:$0xff]  }
 0x4ec   : > { %2036 = vmatpush3.bf16.xpose.msra.mxu1 %v1122_v42  ;;  %2037 = vmatprep.mubr.msk.bf16.mxu1 %vm2255_vm1, %v2254_v31 }
 0x4ed   : > { %v1016_v45 = vpack.c.bf16 %v1014_v43, %v1014_v43  ;;  %2047 = vmatprep.subr.bf16.mxu1 %v2254_v31 }
 0x4ef   : > { %2032 = vmatmul.mubr.msk.bf16.vlgmr.msra.gmra.mrb[8].mxu0 %vm992_vm6, %v1016_v45 }
 0x4f0   : > { %2042 = vmatpush3.bf16.xpose.msra.mxu0 %v1172_v46  ;;  %2043 = vmatprep.mubr.msk.bf16.mxu0 %vm2255_vm1, %v2254_v31 }
 0x4f1   : > { %2053 = vmatprep.subr.bf16.mxu0 %v2254_v31 }
 0x4f3   : > { %2038 = vmatmul.mubr.msk.bf16.vlgmr.msra.gmra.mrb[8].mxu1 %vm897_vm3, %v1115_v47  ;;  %v1939_v47 = vld [vmem:[%s2733_s1] ss:$0 sm:$0xff] }
 0x4f4   : > { %2049 = vmatprep.mubr.msk.bf16.mxu1 %vm2255_vm1, %v2254_v31 }
 0x4f7   : > { %2044 = vmatmul.mubr.msk.bf16.vlgmr.msra.gmra.mrb[12].mxu0 %vm897_vm3, %v1165_v48 }
 0x4f8   : > { %2055 = vmatprep.mubr.msk.bf16.mxu0 %vm2255_vm1, %v2254_v31 }
 0x5be   : > { %v2558_v50 = vpop.f32.mrb[4].mxu1 }
 0x5bf   : > { %v2027_v51 = vpop.f32.mrb[5].mxu1 }
 0x5c0   : > { %v1063_v52 = vpop.f32.mrb[6].mxu1 }
 0x5c1   : > { %v2028_v53 = vpop.f32.mrb[7].mxu1 }
 0x5c2   : > { %v2560_v54 = vpop.f32.mrb[8].mxu0 }
 0x5c3   : > { %v2033_v55 = vpop.f32.mrb[9].mxu0 }
 0x5c4   : > { %v1111_v56 = vpop.f32.mrb[10].mxu0 }
 0x5c5   : > { %v2034_v57 = vpop.f32.mrb[11].mxu0 }
 0x5c6   : > { %v1158_v58 = vpop.f32.mrb[8].mxu1 }
 0x5c7   : > { %v1159_v59 = vadd.f32 %v1158_v58, %v2522_v3  ;;  %v2039_v60 = vpop.f32.mrb[9].mxu1 }
 0x5c8   : > { %v1161_v61 = vpop.f32.mrb[10].mxu1 }
 0x5c9   : > { %v2040_v62 = vpop.f32.mrb[11].mxu1  ;;  %v1214_v63 = vsel %vm992_vm6, %v1159_v59, -inf }
 0x5ca   : > { %v1208_v0 = vpop.f32.mrb[12].mxu0  ;;  %1215 = vmax.xlane.f32.xlu0 %v1214_v63 }
 0x5cb   : > { %v1209_v1 = vadd.f32 %v1208_v0, %v2526_v10  ;;  %v2045_v2 = vpop.f32.mrb[13].mxu0 }
 0x5cc   : > { %v1211_v4 = vpop.f32.mrb[14].mxu0 }
 0x5cd   : > { %v2046_v5 = vpop.f32.mrb[15].mxu0  ;;  %v1217_v6 = vsel %vm992_vm6, %v1209_v1, -inf }
 0x5ce   : > { %1218 = vmax.xlane.f32.xlu1 %v1217_v6  ;;  %v2148_v5 = vld [vmem:[%s2436_s4 + $0x8] sm:$0xff]  }
 0x5df   : > { %1238 = vrot.lane.b32.xlu1 %v2501_v41, %s2263_s17 }
 0x657   : > { %v1216_v7 = vpop.xlane.xlu0 %1215 }
 0x658   : > { %v1220_v3 = vsub.f32 %v1159_v59, %v1216_v7 }
 0x65a   : > { %v1222_v8 = vmul.f32 1.442695, %v1220_v3 }
 0x65b   : > { %v1219_v9 = vpop.xlane.xlu1 %1218 }
 0x65c   : > { %2163 = vpow2.f32 %v1222_v8  ;;  %v1221_v11 = vsub.f32 %v1209_v1, %v1219_v9 }
 0x65e   : > { %v1224_v12 = vmul.f32 1.442695, %v1221_v11 }
 0x65f   : > { %v1239_v13 = vpop.permute.xlu1 %1238 }
 0x660   : > { %2165 = vpow2.f32 %v1224_v12  ;;  %v1244_v10 = vsel %vm1022_vm7, %v1239_v13, 0 }
 0x661   : > { %2048 = vmatpush3.bf16.msra.mxu1 %v1244_v10 }
 0x662   : > { %2059 = vmatprep.subr.bf16.mxu1 %v2254_v31 }
 0x666   : > { %v2164_v14 = vpop.eup %2163 }
 0x667   : > { %v1226_v15 = vsel %vm992_vm6, %v2164_v14, 0.0 }
 0x668   : > { %1227 = vadd.xlane.f32.xlu0 %v1226_v15 }
 0x66a   : > { %v2166_v16 = vpop.eup %2165 }
 0x66b   : > { %v1229_v41 = vsel %vm992_vm6, %v2166_v16, 0.0 }
 0x66c   : > { %1230 = vadd.xlane.f32.xlu0 %v1229_v41  ;;  %v1944_v41 = vld [vmem:[%s2735_s18] ss:$0 sm:$0xff] }
 0x682   : > { %1286 = vrot.lane.b32.xlu0 %v2504_v49, %s2263_s17 }
 0x6f5   : > { %v1228_v17 = vpop.xlane.xlu0 %1227 }
 0x6f6   : > { %2167 = vrcp.f32 %v1228_v17 }
 0x6f9   : > { %v1231_v18 = vpop.xlane.xlu0 %1230 }
 0x6fa   : > { %2169 = vrcp.f32 %v1231_v18 }
 0x6fd   : > { %v1287_v19 = vpop.permute.xlu0 %1286 }
 0x6fe   : > { %v1292_v20 = vsel %vm1022_vm7, %v1287_v19, 0 }
 0x6ff   : > { %2054 = vmatpush3.bf16.msra.mxu0 %v1292_v20 }
 0x700   : > { %v2168_v21 = vpop.eup %2167  ;;  %2067 = vmatprep.subr.bf16.mxu0 %v2254_v31 }
 0x701   : > { %v1234_v22 = vmul.f32 %v2168_v21, %v2164_v14  ;;  %v2149_v21 = vld [vmem:[%s2446_s3] sm:$0xff]  }
 0x703   : > { %v1236_v23 = vpack.c.bf16 %v1234_v22, %v1234_v22  ;;  %v2150_v22 = vld [vmem:[%s2446_s3 + $0x8] sm:$0xff]  }
 0x704   : > { %v2170_v24 = vpop.eup %2169 }
 0x705   : > { %v1235_v25 = vmul.f32 %v2170_v24, %v2166_v16  ;;  %2050 = vmatmul.mubr.msk.bf16.vlgmr.msra.gmra.mrb[12].mxu1 %vm992_vm6, %v1236_v23  ;;  %v2151_v23 = vld [vmem:[%s2446_s3 + $0x10] sm:$0xff]   ;;  %v2152_v24 = vld [vmem:[%s2446_s3 + $0x18] sm:$0xff]  }
 0x706   : > { %2063 = vmatprep.mubr.msk.bf16.mxu1 %vm2255_vm1, %v2254_v31  ;;  %2060 = vmatpush3.bf16.msra.mxu1 %v2145_v26 }
 0x707   : > { %v1237_v49 = vpack.c.bf16 %v1235_v25, %v1235_v25  ;;  %2061 = vmatprep.subr.bf16.mxu1 %v2254_v31  ;;  %v1945_v25 = vld [vmem:[%s705_s6] ss:$0 sm:$0xff] }
 0x709   : > { %2056 = vmatmul.mubr.msk.bf16.vlgmr.msra.gmra.mrb[16].mxu0 %vm992_vm6, %v1237_v49 }
 0x70a   : > { %2071 = vmatprep.mubr.msk.bf16.mxu0 %vm2255_vm1, %v2254_v31  ;;  %2062 = vmatpush3.bf16.msra.mxu1 %v2146_v27 }
 0x70b   : > { %2075 = vmatprep.subr.bf16.mxu1 %v2254_v31 }
 0x7d8   : > { %v1280_v28 = vpop.f32.mrb[12].mxu1 }
 0x7d9   : > { %v2051_v29 = vpop.f32.mrb[13].mxu1 }
 0x7da   : > { %v1283_v30 = vpop.f32.mrb[14].mxu1 }
 0x7db   : > { %v2052_v32 = vpop.f32.mrb[15].mxu1 }
 0x7dc   : > { %v1328_v35 = vpop.f32.mrb[16].mxu0 }
 0x7dd   : > { %v2137_v36 = vpack.i.bf16 %v1328_v35, %v1280_v28  ;;  %v2057_v37 = vpop.f32.mrb[17].mxu0 }
 0x7de   : > { %v1331_v38 = vpop.f32.mrb[18].mxu0 }
 0x7df   : > { %v2058_v39 = vpop.f32.mrb[19].mxu0  ;;  %2138 = vrot.lane.b32.xlu1 %v2137_v36, %s2264_s24 }
 0x851   : > { %v2139_v40 = vpop.permute.xlu1 %2138 }
 0x852   : > { %v2141_v42 = vunpack.i.h.bf16 %v2139_v40  ;;  %v2140_v43 = vunpack.i.l.bf16 %v2139_v40 }
 0x854   : > { %v1343_v44 = vsel %vm897_vm3, %v2560_v54, %v2141_v42  ;;  %v1342_v45 = vsel %vm897_vm3, %v2558_v50, %v2140_v43 }
 0x855   : > { %v1344_v46 = vpack.c.bf16 %v1343_v44, %v1342_v45 }
 0x857   : > { %2064 = vmatmul.mubr.msk.bf16.vlgmr.msra.gmra.mrb[16].mxu1 %vm844_vm2, %v1344_v46 }
 0x858   : > { %2083 = vmatprep.mubr.msk.bf16.mxu1 %vm2255_vm1, %v2254_v31  ;;  %2076 = vmatpush3.bf16.msra.mxu1 %v2149_v21 }
 0x859   : > { %2077 = vmatprep.subr.bf16.mxu1 %v2254_v31 }
 0x85c   : > { %2078 = vmatpush3.bf16.msra.mxu1 %v2150_v22 }
 0x85d   : > { %2079 = vmatprep.subr.bf16.mxu1 %v2254_v31 }
 0x860   : > { %2080 = vmatpush3.bf16.msra.mxu1 %v2151_v23 }
 0x861   : > { %2081 = vmatprep.subr.bf16.mxu1 %v2254_v31 }
 0x864   : > { %2082 = vmatpush3.bf16.msra.mxu1 %v2152_v24 }
 0x92a   : > { %v1405_v48 = vpop.f32.mrb[16].mxu1 }
 0x92b   : > { %v1406_v51 = vadd.f32 %v1939_v47, %v1405_v48  ;;  %v2065_v52 = vpop.f32.mrb[17].mxu1 }
 0x92c   : > { %v1408_v53 = vpop.f32.mrb[18].mxu1 }
 0x92d   : > { %v1409_v55 = vadd.f32 %v1939_v47, %v1408_v53  ;;  %v2066_v54 = vpop.f32.mrb[19].mxu1  ;;  %v1412_v56 = vadd.f32 %v1406_v51, %v2483_v33 }
 0x92f   : > { %v1416_v50 = vsel %vm844_vm2, %v1412_v56, 0.0  ;;  %v1413_v57 = vadd.f32 %v1409_v55, %v2485_v34  ;;  %v2147_v34 = vld [vmem:[%s2436_s4] sm:$0xff]   ;;  %s2734_s4 = scalar_lea.vmem %s2694_s8, %s2404_s30 }
 0x930   : > { %1417 = vadd.xlane.f32.xlu1 %v1416_v50  ;;  %2068 = vmatpush3.bf16.msra.mxu0 %v2147_v34  ;;  %v1943_v13 = vld [vmem:[%s2734_s4] ss:$0 sm:$0xff] }
 0x931   : > { %v1419_v58 = vsel %vm844_vm2, %v1413_v57, 0.0  ;;  %2069 = vmatprep.subr.bf16.mxu0 %v2254_v31 }
 0x932   : > { %1420 = vadd.xlane.f32.xlu0 %v1419_v58 }
 0x934   : > { %2070 = vmatpush3.bf16.msra.mxu0 %v2148_v5 }
 0x935   : > { %2087 = vmatprep.subr.bf16.mxu0 %v2254_v31 }
 0x9bd   : > { %v1418_v59 = vpop.xlane.xlu1 %1417 }
 0x9be   : > { %v1423_v60 = vmul.f32 0.03125, %v1418_v59 }
 0x9bf   : > { %v1421_v61 = vpop.xlane.xlu0 %1420 }
 0x9c0   : > { %v1425_v62 = vsub.f32 %v1412_v56, %v1423_v60  ;;  %v1424_v63 = vmul.f32 0.03125, %v1421_v61  ;;  %v1949_v56 = vld [vmem:[%s713_s28] ss:$0 sm:$0xff] }
 0x9c2   : > { %v1426_v0 = vsub.f32 %v1413_v57, %v1424_v63  ;;  %v1427_v1 = vmul.f32 %v1425_v62, %v1425_v62 }
 0x9c4   : > { %v1429_v2 = vsel %vm844_vm2, %v1427_v1, 0.0  ;;  %v1428_v33 = vmul.f32 %v1426_v0, %v1426_v0 }
 0x9c5   : > { %1430 = vadd.xlane.f32.xlu0 %v1429_v2 }
 0x9c6   : > { %v1432_v4 = vsel %vm844_vm2, %v1428_v33, 0.0 }
 0x9c7   : > { %1433 = vadd.xlane.f32.xlu1 %v1432_v4 }
 0xa52   : > { %v1431_v6 = vpop.xlane.xlu0 %1430 }
 0xa53   : > { %v1435_v7 = vmul.f32 0.03125, %v1431_v6 }
 0xa54   : > { %v1434_v3 = vpop.xlane.xlu1 %1433 }
 0xa55   : > { %v1437_v8 = vadd.f32 1e-12, %v1435_v7  ;;  %v1436_v9 = vmul.f32 0.03125, %v1434_v3 }
 0xa57   : > { %2171 = vrsqrt.f32 %v1437_v8  ;;  %v1438_v11 = vadd.f32 1e-12, %v1436_v9 }
 0xa59   : > { %2173 = vrsqrt.f32 %v1438_v11  ;;  %v2153_v11 = vld [vmem:[%s2736_s29] sm:$0xff]  }
 0xa61   : > { %v2172_v12 = vpop.eup %2171 }
 0xa62   : > { %v1441_v10 = vmul.f32 %v2172_v12, %v1425_v62  ;;  %v2154_v12 = vld [vmem:[%s2736_s29 + $0x8] sm:$0xff]  }
 0xa63   : > { %v2174_v14 = vpop.eup %2173 }
 0xa64   : > { %v1449_v15 = vmul.f32 %v1943_v13, %v1441_v10  ;;  %v1442_v16 = vmul.f32 %v2174_v14, %v1426_v0 }
 0xa66   : > { %v1450_v17 = vmul.f32 %v1943_v13, %v1442_v16  ;;  %v1457_v18 = vadd.f32 %v1944_v41, %v1449_v15 }
 0xa68   : > { %v1458_v19 = vadd.f32 %v1944_v41, %v1450_v17 }
 0xa6a   : > { %v1459_v20 = vpack.c.bf16 %v1458_v19, %v1457_v18 }
 0xa6c   : > { %2072 = vmatmul.mubr.msk.bf16.vlgmr.msra.gmra.mrb[20].mxu0 %vm844_vm2, %v1459_v20 }
 0xa6d   : > { %2091 = vmatprep.mubr.msk.bf16.mxu0 %vm2255_vm1, %v2254_v31  ;;  %2088 = vmatpush3.bf16.msra.mxu0 %v2153_v11 }
 0xa6e   : > { %2089 = vmatprep.subr.bf16.mxu0 %v2254_v31  ;;  %v1956_v31 = vld [vmem:[%s719_s16] ss:$0 sm:$0xff] }
 0xa71   : > { %2090 = vmatpush3.bf16.msra.mxu0 %v2154_v12 }
 0xb3f   : > { %v1520_v49 = vpop.f32.mrb[20].mxu0 }
 0xb40   : > { %v1521_v26 = vadd.f32 %v1945_v25, %v1520_v49  ;;  %v2073_v27 = vpop.f32.mrb[21].mxu0 }
 0xb41   : > { %v1523_v28 = vpop.f32.mrb[22].mxu0 }
 0xb42   : > { %v1527_v29 = vmul.f32 %v1521_v26, %v1521_v26  ;;  %v1524_v30 = vadd.f32 %v1945_v25, %v1523_v28  ;;  %v2074_v32 = vpop.f32.mrb[23].mxu0 }
 0xb44   : > { %v1529_v35 = vmul.f32 %v1527_v29, %v1521_v26  ;;  %v1528_v36 = vmul.f32 %v1524_v30, %v1524_v30 }
 0xb46   : > { %v1531_v37 = vmul.f32 0.044715, %v1529_v35  ;;  %v1530_v38 = vmul.f32 %v1528_v36, %v1524_v30 }
 0xb48   : > { %v1533_v39 = vadd.f32 %v1531_v37, %v1521_v26  ;;  %v1532_v40 = vmul.f32 0.044715, %v1530_v38 }
 0xb4a   : > { %v1535_v42 = vmul.f32 0.7978846, %v1533_v39  ;;  %v1534_v43 = vadd.f32 %v1532_v40, %v1524_v30 }
 0xb4c   : > { %2175 = vtanh.f32 %v1535_v42  ;;  %v1536_v44 = vmul.f32 0.7978846, %v1534_v43 }
 0xb4e   : > { %2177 = vtanh.f32 %v1536_v44 }
 0xb56   : > { %v2176_v45 = vpop.eup %2175 }
 0xb57   : > { %v1539_v46 = vadd.f32 1.0, %v2176_v45 }
 0xb58   : > { %v2178_v47 = vpop.eup %2177 }
 0xb59   : > { %v1541_v48 = vmul.f32 0.5, %v1539_v46  ;;  %v1540_v51 = vadd.f32 1.0, %v2178_v47 }
 0xb5b   : > { %v1542_v52 = vmul.f32 0.5, %v1540_v51  ;;  %v1543_v53 = vmul.f32 %v1541_v48, %v1521_v26 }
 0xb5d   : > { %v1544_v55 = vmul.f32 %v1542_v52, %v1524_v30 }
 0xb5f   : > { %v1545_v54 = vpack.c.bf16 %v1544_v55, %v1543_v53 }
 0xb61   : > { %2084 = vmatmul.mubr.msk.bf16.vlgmr.msra.gmra.mrb[20].mxu1 %vm1585_vm8, %v1545_v54 }
 0xc34   : > { %v1623_v50 = vpop.f32.mrb[20].mxu1 }
 0xc35   : > { %v1624_v57 = vadd.f32 %v1949_v56, %v1623_v50  ;;  %v2085_v58 = vpop.f32.mrb[21].mxu1 }
 0xc36   : > { %v1626_v59 = vpop.f32.mrb[22].mxu1 }
 0xc37   : > { %v1627_v60 = vadd.f32 %v1949_v56, %v1626_v59  ;;  %v2086_v61 = vpop.f32.mrb[23].mxu1  ;;  %v1630_v62 = vadd.f32 %v1624_v57, %v1457_v18  ;;  %v1955_v18 = vld [vmem:[%s716_s19] ss:$0 sm:$0xff]  ;;  %s2265_s19 = smov [#allocation6]  }
 0xc38   : > { %s1748_s0 = sshll.u32 %s2265_s19, 4  ;;  %s1749_s0 = int_to_ptr.vmem [resolvable:$true] %s1748_s0 }
 0xc39   : > { %v1634_v63 = vsel %vm844_vm2, %v1630_v62, 0.0  ;;  %v1631_v0 = vadd.f32 %v1627_v60, %v1458_v19  ;;  %s2211_s16 = scalar_lea.vmem %s1749_s0, 32  ;;  %p2218_p12 = scmp.lt.s32.totalorder %s1749_s0, %s1749_s0 }
 0xc3a   : > { %1635 = vadd.xlane.f32.xlu0 %v1634_v63  ;;  %p2212_p6 = scmp.ne.s32.totalorder %s1749_s0, %s2211_s16  ;;  %p2219_p13 = scmp.lt.s32.totalorder %s2211_s16, %s2211_s16 }
 0xc3b   : > { %v1637_v1 = vsel %vm844_vm2, %v1631_v0, 0.0 }
 0xc3c   : > { %1638 = vadd.xlane.f32.xlu1 %v1637_v1  ;;  %p2213_p10 = pnand %p2212_p6, %p2109_p4  ;;  %p2220_p0 = por %p2219_p13, %p2218_p12 }
 0xc3e   : > { %p2214_p11 = pneg %p2213_p10 }
 0xc40   : > { %p2221_p1 = pnand %p2220_p0, %p2214_p11 }
 0xcc7   : > { %v1636_v2 = vpop.xlane.xlu0 %1635 }
 0xcc8   : > { %v1640_v33 = vmul.f32 0.03125, %v1636_v2 }
 0xcc9   : > { %v1639_v4 = vpop.xlane.xlu1 %1638 }
 0xcca   : > { %v1642_v34 = vsub.f32 %v1630_v62, %v1640_v33  ;;  %v1641_v5 = vmul.f32 0.03125, %v1639_v4 }
 0xccc   : > { %v1643_v6 = vsub.f32 %v1631_v0, %v1641_v5  ;;  %v1644_v7 = vmul.f32 %v1642_v34, %v1642_v34 }
 0xcce   : > { %v1646_v3 = vsel %vm844_vm2, %v1644_v7, 0.0  ;;  %v1645_v8 = vmul.f32 %v1643_v6, %v1643_v6 }
 0xccf   : > { %1647 = vadd.xlane.f32.xlu0 %v1646_v3 }
 0xcd0   : > { %v1649_v9 = vsel %vm844_vm2, %v1645_v8, 0.0 }
 0xcd1   : > { %1650 = vadd.xlane.f32.xlu1 %v1649_v9 }
 0xd5c   : > { %v1648_v13 = vpop.xlane.xlu0 %1647 }
 0xd5d   : > { %v1652_v10 = vmul.f32 0.03125, %v1648_v13 }
 0xd5e   : > { %v1651_v14 = vpop.xlane.xlu1 %1650 }
 0xd5f   : > { %v1654_v15 = vadd.f32 1e-12, %v1652_v10  ;;  %v1653_v16 = vmul.f32 0.03125, %v1651_v14 }
 0xd61   : > { %2179 = vrsqrt.f32 %v1654_v15  ;;  %v1655_v41 = vadd.f32 1e-12, %v1653_v16 }
 0xd63   : > { %2181 = vrsqrt.f32 %v1655_v41 }
 0xd6b   : > { %v2180_v17 = vpop.eup %2179 }
 0xd6c   : > { %v1658_v19 = vmul.f32 %v2180_v17, %v1642_v34 }
 0xd6d   : > { %v2182_v20 = vpop.eup %2181 }
 0xd6e   : > { %v1666_v21 = vmul.f32 %v1955_v18, %v1658_v19  ;;  %v1659_v22 = vmul.f32 %v2182_v20, %v1643_v6 }
 0xd70   : > { %v1674_v23 = vadd.f32 %v1956_v31, %v1666_v21  ;;  %v1667_v24 = vmul.f32 %v1955_v18, %v1659_v22 }
 0xd72   : > { %1676 = vst.msk [vmem:[#allocation2] sm:$0xff] %vm844_vm2, %v1674_v23  ;;  %v1675_v25 = vadd.f32 %v1956_v31, %v1667_v24 }
 0xd74   : > { %1677 = vst.msk [vmem:[#allocation2 + $0x8] sm:$0xff] %vm844_vm2, %v1675_v25 }
 0xd7b   : > { %v1678_v49 = vld [vmem:[#allocation2] ss:$8 sm:$0x3] }
 0xd7c   : > { %v1679_v26 = vpack.c.bf16 %v1678_v49, %v1678_v49 }
 0xd7e   : > { %2092 = vmatmul.mubr.msk.bf16.vlgmr.msra.gmra.mrb[24].mxu0 %vm844_vm2, %v1679_v26 }
 0xe51   : > { %v1733_v27 = vpop.f32.mrb[24].mxu0 }
 0xe52   : > { %1740 = vst.msk [vmem:[#allocation6] sm:$0x3] %vm1739_vm9, %v1733_v27  ;;  %v2093_v28 = vpop.f32.mrb[25].mxu0 }
 0xe53   : > { %v1736_v29 = vpop.f32.mrb[26].mxu0 }
 0xe54   : > { %2224 = shalt.err (!%p2221_p1)
}
 0xe55   : > { %s2737_s17 = sld [smem:[#allocation17_spill]] }
 0xe5b   : > { %s2225_s20 = scalar_lea.hbm %s2737_s17, 32 }
 0xe5c   : > { %p2226_p5 = scmp.ne.s32.totalorder %s2737_s17, %s2225_s20  ;;  %p2231_p8 = scmp.lt.u32.totalorder %s2225_s20, %s2737_s17 }
 0xe5e   : > { %p2227_p7 = pnand %p2226_p5, %p2109_p4 }
 0xe60   : > { %p2228_p9 = pneg %p2227_p7 }
 0xe62   : > { %p2233_p2 = pnand %p2231_p8, %p2228_p9 }
 0xe64   : > { %2236 = shalt.err (!%p2233_p2)
}
 0xe65   : > { %2100 = dma.vmem_to_hbm [thread:$0]  (%p2109_p4), %s1749_s0, 32, %s2737_s17, [#allocation5]   ;;  %v2094_v30 = vpop.f32.mrb[27].mxu0 }
 0xe66   : > { %2246 = dma.done.wait (%p2109_p4), [#allocation5], 32  }
 0xe67   : > { %2248 = vsyncadd (%p2109_p4), [#allocation5], 4294967264 }
 0xe68 PF: > { %s2738_s21 = sld [smem:[#allocation9_spill]] }
 0xe6e   : > { %s29_s24 = sadd.s32 1, %s2738_s21  }
 0xe6f   : > { %p26_p3 = scmp.ge.s32.totalorder %s29_s24, 4  }
 0xe71   :  { %28 = sbr.rel (!%p26_p3) target bundleno = 10 (0xa), region = 157 }
 0xe78   :  { %1761 = vsyncpa [#allocation4], 1 }
 0xe79   :  { %1763 = vsyncpa [#allocation4 + $0x1], 1 }
 0xe7a   :  { %1764 = vsyncpa [#allocation5], 1 }
 0xe7b   :  { %1766 = vsyncpa [#allocation5 + $0x1], 1 }

</bundles_post_ra>
